<compile_context>
chip_gen: v6e
topology: v6e:2x2x1
jax: 0.10.0
libtpu: 0.0.40
codegen_flags: <defaults>
</compile_context>

<pallas_src>
import functools
import numpy as np
import jax
import jax.numpy as jnp
from jax.experimental import pallas as pl
from jax.experimental.pallas import tpu as pltpu


# ----------------- glue (plain JAX): look_at / vertices_to_faces / lighting -----------------

def _normalize_vec(v, eps=1e-12):
    return v / (jnp.linalg.norm(v) + eps)


def nr_look_at(vertices, eye, at=(0.0, 0.0, 0.0), up=(0.0, 1.0, 0.0)):
    """vertices: (B, N, 3) world coords -> camera frame (neural_renderer look_at)."""
    eye = jnp.asarray(eye, jnp.float32)
    at = jnp.asarray(at, jnp.float32)
    up = jnp.asarray(up, jnp.float32)
    z_axis = _normalize_vec(at - eye)
    x_axis = _normalize_vec(jnp.cross(up, z_axis))
    y_axis = _normalize_vec(jnp.cross(z_axis, x_axis))
    rot = jnp.stack([x_axis, y_axis, z_axis], axis=0)          # (3, 3)
    return (vertices - eye[None, None, :]) @ rot.T


def nr_vertices_to_faces(vertices, faces):
    """vertices: (B, N, 3), faces: (B, F, 3) int32 -> (B, F, 3, 3)."""
    return jax.vmap(lambda v, f: v[f])(vertices, faces)


def nr_lighting(face_verts, textures, int_amb, int_dir, col_amb, col_dir, direction):
    """face_verts: (B, F, 3, 3); textures: (B, F, ts, ts, ts, 3)."""
    v0 = face_verts[:, :, 0]
    v1 = face_verts[:, :, 1]
    v2 = face_verts[:, :, 2]
    n = jnp.cross(v1 - v0, v2 - v0)
    n = n / (jnp.linalg.norm(n, axis=-1, keepdims=True) + 1e-12)
    direction = jnp.asarray(direction, jnp.float32)
    col_amb = jnp.asarray(col_amb, jnp.float32)
    col_dir = jnp.asarray(col_dir, jnp.float32)
    cos = jnp.maximum(jnp.sum(n * direction[None, None, :], axis=-1), 0.0)   # (B, F)
    light = (int_amb * col_amb[None, None, :]
             + int_dir * col_dir[None, None, :] * cos[..., None])            # (B, F, 3)
    return textures * light[:, :, None, None, None, :]


# ----------------- XLA pre-pass: per-face coefficients + per-band face bins -----------------

_NUM_COEF = 12  # rows 0-5 barycentric affine (x inv_det), 6-8 1/z, 9-11 uniform RGB


def _prepare_face_data(face_verts, uniform_rgb, sup_size, tile_h, num_bands, eps):
    """face_verts: (B,F,3,3) cam space -> (coef (12,B*F), counts (B*NB,), flist (B*NB*F,))."""
    B, F = face_verts.shape[:2]
    S = float(sup_size)
    fv = face_verts.astype(jnp.float32)
    x0, y0, z0 = fv[:, :, 0, 0], fv[:, :, 0, 1], fv[:, :, 0, 2]
    x1, y1, z1 = fv[:, :, 1, 0], fv[:, :, 1, 1], fv[:, :, 1, 2]
    x2, y2, z2 = fv[:, :, 2, 0], fv[:, :, 2, 1], fv[:, :, 2, 2]

    det = (x1 - x0) * (y2 - y0) - (x2 - x0) * (y1 - y0)
    det_ok = jnp.abs(det) >= eps
    det_safe = jnp.where(jnp.abs(det) < eps, 1.0, det)
    inv_det = 1.0 / det_safe          # signed: barycentric signs then work for BOTH windings

    # barycentric weights as affine functions of (x, y): w0 = aw0*x + bw0*y + cw0, etc.
    aw0, bw0, cw0 = (y1 - y2) * inv_det, (x2 - x1) * inv_det, (x1 * y2 - x2 * y1) * inv_det
    aw1, bw1, cw1 = (y2 - y0) * inv_det, (x0 - x2) * inv_det, (x2 * y0 - x0 * y2) * inv_det

    def inv_safe(z):
        return 1.0 / jnp.where(jnp.abs(z) < 1e-8, 1e-8, z)
    iz0, iz1, iz2 = inv_safe(z0), inv_safe(z1), inv_safe(z2)

    xmin = jnp.minimum(jnp.minimum(x0, x1), x2)
    xmax = jnp.maximum(jnp.maximum(x0, x1), x2)
    ymin = jnp.minimum(jnp.minimum(y0, y1), y2)
    ymax = jnp.maximum(jnp.maximum(y0, y1), y2)
    zmin = jnp.minimum(jnp.minimum(z0, z1), z2)
    onscreen_x = (xmax >= -1.0) & (xmin <= 1.0)
    # cull faces straddling the camera plane (1/z interpolation would be bogus)
    fvalid = det_ok & onscreen_x & (zmin > 0.0)                 # (B, F) bool

    # conservative super-sampled row bbox (row = (S - 1 - S*y) / 2)
    row_lo = jnp.floor((S - 1.0 - S * ymax) * 0.5) - 1.0
    row_hi = jnp.ceil((S - 1.0 - S * ymin) * 0.5) + 1.0

    urgb = uniform_rgb.astype(jnp.float32)
    rows = [aw0, bw0, cw0, aw1, bw1, cw1, iz0, iz1, iz2,
            urgb[..., 0], urgb[..., 1], urgb[..., 2]]
    coef = jnp.stack(rows, axis=0).astype(jnp.float32).reshape(_NUM_COEF, B * F)

    # per-(batch, band) face bins: only faces whose row bbox intersects the band
    band_start = (jnp.arange(num_bands) * tile_h).astype(jnp.float32)       # (NB,)
    inter = (fvalid[:, None, :]
             & (row_hi[:, None, :] >= band_start[None, :, None])
             & (row_lo[:, None, :] <= band_start[None, :, None] + float(tile_h - 1)))
    counts = jnp.sum(inter, axis=-1).astype(jnp.int32).reshape(-1)          # (B*NB,)
    # compaction: intersecting face ids first (order irrelevant for z-buffer result)
    flist = jnp.argsort(jnp.logical_not(inter).astype(jnp.int32), axis=-1)
    flist = flist.astype(jnp.int32).reshape(-1)                             # (B*NB*F,)
    return coef, counts, flist


def _build_texel_table(lit_textures):
    """(B, F, ts, ts, ts, 3) lit RGB -> (ts^3*3, B*F) f32 (faces on the long/last axis)."""
    B, F = lit_textures.shape[:2]
    ts = lit_textures.shape[2]
    t = lit_textures.astype(jnp.float32).reshape(B, F, ts * ts * ts * 3)
    return jnp.transpose(t, (2, 0, 1)).reshape(ts * ts * ts * 3, B * F)


def _reachable_texel_indices(ts):
    """With w0n+w1n+w2n == 1, floor(w*ts) triples can only sum to ts-2..ts."""
    out = []
    for a in range(ts):
        for b in range(ts):
            for c in range(ts):
                if ts - 2 <= a + b + c <= ts:
                    out.append((a * ts + b) * ts + c)
    return out


def _pick_tile_rows(sup_size, anti_aliasing):
    """Prefer small bands (TH=32 then 16) so per-face temporaries stay in vregs."""
    step = 16 if anti_aliasing else 8
    for cand in (32, 16, 48, 64, 96, 128, 8, 24):
        if cand % step == 0 and cand <= sup_size and sup_size % cand == 0:
            return cand
    th = step
    while th < sup_size:
        if sup_size % th == 0:
            return th
        th += step
    return sup_size


# ----------------- Pallas rasterization kernel -----------------

def _raster_kernel(cnt_ref, flist_ref, coef_ref, *rest,
                   num_faces, num_bands, tex_size, with_texture, silhouette_only,
                   tile_h, sup_size, anti_aliasing, pack_out, near, far, bg, eps):
    """Grid step (b, t): rasterize row band t of batch element b.

    cnt_ref  : SMEM (B*NB,)      number of faces binned into each (batch, band)
    flist_ref: SMEM (B*NB*F,)    band-compacted face id lists
    coef_ref : SMEM (12, B*F)    per-face barycentric affine coeffs, 1/z, uniform RGB
    [tex_ref]: SMEM (ts^3*3,B*F) lit texel RGB (textured mode only)
    [arow/acol_ref]: VMEM AA pool matrices (anti_aliasing only, loaded once)
    outputs  : sil-only (1,THo,W) | packed (1,THo,4*W) | img (1,3,THo,W) + sil (1,THo,W)
    scratch  : VMEM (TH,S) zbuf [+ r,g,b when not silhouette_only]
    """
    pos = 0
    tex_ref = arow_ref = acol_ref = None
    if with_texture:
        tex_ref = rest[pos]; pos += 1
    if anti_aliasing:
        arow_ref = rest[pos]; acol_ref = rest[pos + 1]; pos += 2
    if silhouette_only:
        sil_ref = rest[pos]; pos += 1
    elif pack_out:
        pk_ref = rest[pos]; pos += 1
    else:
        img_ref = rest[pos]; sil_ref = rest[pos + 1]; pos += 2
    zb_ref = rest[pos]; pos += 1
    if not silhouette_only:
        r_ref, g_ref, b_ref = rest[pos], rest[pos + 1], rest[pos + 2]

    b = pl.program_id(0)
    t = pl.program_id(1)
    S = sup_size
    TH = tile_h
    F = num_faces
    NB = num_bands
    ts = tex_size
    Wo = S // 2 if anti_aliasing else S

    row0 = t * TH
    # pixel-center NDC coords for this band (hoisted out of the face loop)
    li = jax.lax.broadcasted_iota(jnp.int32, (TH, S), 0)
    ci = jax.lax.broadcasted_iota(jnp.int32, (TH, S), 1)
    rowg = (li + row0).astype(jnp.float32)
    colf = ci.astype(jnp.float32)
    yi = jnp.float32(S - 1) - rowg                            # vertical flip folded in
    yp = (2.0 * yi + 1.0 - S) * jnp.float32(1.0 / S)
    xp = (2.0 * colf + 1.0 - S) * jnp.float32(1.0 / S)

    # init per-band accumulators (re-initialized every grid step)
    zb_ref[...] = jnp.full((TH, S), jnp.float32(far))
    if not silhouette_only:
        r_ref[...] = jnp.full((TH, S), jnp.float32(bg[0]))
        g_ref[...] = jnp.full((TH, S), jnp.float32(bg[1]))
        b_ref[...] = jnp.full((TH, S), jnp.float32(bg[2]))

    def _recip(x):
        # approx EUP reciprocal + one Newton step (~fp32 accurate, avoids z-fighting)
        y = pl.reciprocal(x, approx=True)
        return y * (2.0 - x * y)

    band = b * NB + t
    count = cnt_ref[band]

    def face_body(i, carry):
        f = flist_ref[band * F + i]
        idx = b * F + f
        aw0 = coef_ref[0, idx]; bw0 = coef_ref[1, idx]; cw0 = coef_ref[2, idx]
        aw1 = coef_ref[3, idx]; bw1 = coef_ref[4, idx]; cw1 = coef_ref[5, idx]
        iz0 = coef_ref[6, idx]; iz1 = coef_ref[7, idx]; iz2 = coef_ref[8, idx]

        # barycentric weights (inv_det folded into coefficients); signs give the
        # inside test for both windings (no edge functions needed)
        w0 = aw0 * xp + bw0 * yp + cw0
        w1 = aw1 * xp + bw1 * yp + cw1
        w2 = 1.0 - w0 - w1
        inside = (w0 >= 0.0) & (w1 >= 0.0) & (w2 >= 0.0)

        w0c = jnp.clip(w0, 0.0, 1.0)
        w1c = jnp.clip(w1, 0.0, 1.0)
        w2c = jnp.clip(w2, 0.0, 1.0)
        inv_wsum = _recip(jnp.maximum(w0c + w1c + w2c, jnp.float32(eps)))
        w0n = w0c * inv_wsum
        w1n = w1c * inv_wsum
        w2n = w2c * inv_wsum

        # perspective-correct depth: zp = 1 / sum(w_k / z_k)
        inv_zp = w0n * iz0 + w1n * iz1 + w2n * iz2
        zp = _recip(jnp.maximum(inv_zp, jnp.float32(1e-8)))

        zcur = zb_ref[...]
        closer = inside & (zp > near) & (zp < far) & (zp < zcur)
        zb_ref[...] = jnp.where(closer, zp, zcur)

        if not silhouette_only:
            if with_texture:
                tsf = jnp.float32(ts)
                t0 = jnp.clip(jnp.floor(w0n * tsf), 0.0, tsf - 1.0)
                t1 = jnp.clip(jnp.floor(w1n * tsf), 0.0, tsf - 1.0)
                t2 = jnp.clip(jnp.floor(w2n * tsf), 0.0, tsf - 1.0)
                tidx = (t0 * tsf + t1) * tsf + t2
                reach = _reachable_texel_indices(ts)
                n0 = reach[0]
                fr = tex_ref[n0 * 3 + 0, idx]
                fg = tex_ref[n0 * 3 + 1, idx]
                fb = tex_ref[n0 * 3 + 2, idx]
                for n in reach[1:]:
                    sel = tidx == jnp.float32(n)
                    fr = jnp.where(sel, tex_ref[n * 3 + 0, idx], fr)
                    fg = jnp.where(sel, tex_ref[n * 3 + 1, idx], fg)
                    fb = jnp.where(sel, tex_ref[n * 3 + 2, idx], fb)
            else:
                fr = coef_ref[9, idx]
                fg = coef_ref[10, idx]
                fb = coef_ref[11, idx]
            r_ref[...] = jnp.where(closer, fr, r_ref[...])
            g_ref[...] = jnp.where(closer, fg, g_ref[...])
            b_ref[...] = jnp.where(closer, fb, b_ref[...])
        return carry

    jax.lax.fori_loop(0, count, face_body, jnp.int32(0))

    # silhouette == "some face with zp in (near, far) won the depth test at least once"
    cov = (zb_ref[...] < jnp.float32(far)).astype(jnp.float32)

    if anti_aliasing:
        def pool(x):  # 2x2 average pool as two small matmuls on the otherwise idle MXU
            tmp = jnp.dot(arow_ref[...], x, preferred_element_type=jnp.float32)
            return jnp.dot(tmp, acol_ref[...], preferred_element_type=jnp.float32)
    else:
        def pool(x):
            return x

    if silhouette_only:
        sil_ref[0, :, :] = pool(cov)
    elif pack_out:
        # lane-dense packed slab [r | g | b | sil]; HBM writeback is one dense block
        pk_ref[0, :, 0 * Wo:1 * Wo] = pool(r_ref[...])
        pk_ref[0, :, 1 * Wo:2 * Wo] = pool(g_ref[...])
        pk_ref[0, :, 2 * Wo:3 * Wo] = pool(b_ref[...])
        pk_ref[0, :, 3 * Wo:4 * Wo] = pool(cov)
    else:
        img_ref[0, 0, :, :] = pool(r_ref[...])
        img_ref[0, 1, :, :] = pool(g_ref[...])
        img_ref[0, 2, :, :] = pool(b_ref[...])
        sil_ref[0, :, :] = pool(cov)


def rasterize_pallas(face_verts, lit_textures, *, image_size, anti_aliasing, near, far,
                     eps, background_color, tex_size, uniform_texture,
                     silhouette_only=False, tile_rows=None):
    """face_verts: (B, F, 3, 3) camera-space; lit_textures: (B, F, ts, ts, ts, 3) or None.

    Returns silhouette (B,H,W) if silhouette_only, else (image (B,3,H,W), silhouette).
    """
    B, F = face_verts.shape[:2]
    S = image_size * 2 if anti_aliasing else image_size
    step = 16 if anti_aliasing else 8

    TH = tile_rows if tile_rows is not None else _pick_tile_rows(S, anti_aliasing)
    if TH is None or TH <= 0 or S % TH != 0 or (TH % step != 0 and TH != S):
        TH = _pick_tile_rows(S, anti_aliasing)      # never fall back to a whole-frame band
    THo = TH // 2 if anti_aliasing else TH
    NB = S // TH
    W = image_size

    with_texture = (not uniform_texture) and (not silhouette_only)
    pack_out = (not silhouette_only) and (W < 128) and ((4 * W) % 128 == 0)

    if uniform_texture and not silhouette_only:
        if lit_textures is None:
            uni_rgb = jnp.ones((B, F, 3), jnp.float32)
        else:
            uni_rgb = jnp.mean(lit_textures, axis=(2, 3, 4))
    else:
        uni_rgb = jnp.zeros((B, F, 3), jnp.float32)

    coef_tab, counts, flist = _prepare_face_data(face_verts, uni_rgb, S, TH, NB, float(eps))

    smem_spec = pl.BlockSpec(memory_space=pltpu.MemorySpace.SMEM)
    in_specs = [smem_spec, smem_spec, smem_spec]
    operands = [counts, flist, coef_tab]
    if with_texture:
        in_specs.append(smem_spec)
        operands.append(_build_texel_table(lit_textures))
    if anti_aliasing:
        # AA pool matrices built once in the wrapper and DMA'd with a constant index_map
        a_row = np.zeros((THo, TH), np.float32)
        a_row[np.arange(THo), 2 * np.arange(THo)] = 0.5
        a_row[np.arange(THo), 2 * np.arange(THo) + 1] = 0.5
        a_col = np.zeros((S, W), np.float32)
        a_col[2 * np.arange(W), np.arange(W)] = 0.5
        a_col[2 * np.arange(W) + 1, np.arange(W)] = 0.5
        in_specs.append(pl.BlockSpec((THo, TH), lambda b, t: (0, 0)))
        in_specs.append(pl.BlockSpec((S, W), lambda b, t: (0, 0)))
        operands.append(jnp.asarray(a_row))
        operands.append(jnp.asarray(a_col))

    if silhouette_only:
        out_specs = [pl.BlockSpec((1, THo, W), lambda b, t: (b, t, 0))]
        out_shape = [jax.ShapeDtypeStruct((B, image_size, W), jnp.float32)]
        scratch = [pltpu.VMEM((TH, S), jnp.float32)]
    elif pack_out:
        out_specs = [pl.BlockSpec((1, THo, 4 * W), lambda b, t: (b, t, 0))]
        out_shape = [jax.ShapeDtypeStruct((B, image_size, 4 * W), jnp.float32)]
        scratch = [pltpu.VMEM((TH, S), jnp.float32) for _ in range(4)]
    else:
        out_specs = [pl.BlockSpec((1, 3, THo, W), lambda b, t: (b, 0, t, 0)),
                     pl.BlockSpec((1, THo, W), lambda b, t: (b, t, 0))]
        out_shape = [jax.ShapeDtypeStruct((B, 3, image_size, W), jnp.float32),
                     jax.ShapeDtypeStruct((B, image_size, W), jnp.float32)]
        scratch = [pltpu.VMEM((TH, S), jnp.float32) for _ in range(4)]

    kernel = functools.partial(
        _raster_kernel,
        num_faces=F, num_bands=NB, tex_size=tex_size,
        with_texture=with_texture, silhouette_only=silhouette_only,
        tile_h=TH, sup_size=S, anti_aliasing=anti_aliasing, pack_out=pack_out,
        near=float(near), far=float(far),
        bg=tuple(float(c) for c in background_color), eps=float(eps),
    )

    outs = pl.pallas_call(
        kernel,
        grid=(B, NB),                # batch leads so megacore (v7x) can split it evenly
        in_specs=in_specs,
        out_specs=out_specs,
        out_shape=out_shape,
        scratch_shapes=scratch,
        compiler_params=pltpu.CompilerParams(
            dimension_semantics=("parallel", "parallel"),
            vmem_limit_bytes=48 * 1024 * 1024),
    )(*operands)

    if silhouette_only:
        return outs[0]
    if pack_out:
        packed = outs[0].reshape(B, image_size, 4, W)
        img = jnp.transpose(packed[:, :, 0:3, :], (0, 2, 1, 3))
        sil = packed[:, :, 3, :]
        return img, sil
    return outs[0], outs[1]


# ----------------- SMPLRenderer (forward: render + render_silhouettes) -----------------

class SMPLRendererPallas:
    def __init__(self, faces, image_size=256, tex_size=3, anti_aliasing=True,
                 fill_back=False, background_color=(0, 0, 0), viewing_angle=30,
                 near=0.1, far=25.0, tile_rows=None):
        self.background_color = background_color
        self.anti_aliasing = anti_aliasing
        self.image_size = image_size
        self.tex_size = tex_size
        self.rasterizer_eps = 1e-3
        self.fill_back = fill_back
        self.faces = jnp.asarray(faces, jnp.int32)          # (F, 3)
        self.nf = int(self.faces.shape[0])
        self.near = near
        self.far = far
        self.viewing_angle = viewing_angle
        self.eye = [0.0, 0.0, -(1.0 / np.tan(np.radians(viewing_angle)) + 1.0)]
        self.tile_rows = tile_rows
        # lighting defaults: ambient only (directional intensity 0)
        self.light_intensity_ambient = 1.0
        self.light_intensity_directional = 0.0
        self.light_color_ambient = [1.0, 1.0, 1.0]
        self.light_color_directional = [1.0, 1.0, 1.0]
        self.light_direction = [0.0, 1.0, 0.0]

    # ---- small utility API mirrored from the module ----
    def set_ambient_light(self, int_dir=0.3, int_amb=0.7, direction=(1, 0.5, 1)):
        self.light_intensity_directional = int_dir
        self.light_intensity_ambient = int_amb
        if direction is not None:
            self.light_direction = list(direction)

    def set_bg_color(self, background_color=(1, 1, 1)):
        self.background_color = background_color

    def debug_textures(self):
        ts = self.tex_size
        return jnp.ones((self.nf, ts, ts, ts, 3), jnp.float32)

    def _batched_faces(self, bs):
        return jnp.tile(self.faces[None], (bs, 1, 1))

    # ---- forward pass ----
    def forward(self, vertices, texture=None):
        # single rasterization pass produces both outputs
        return self._render_both(vertices, texture)

    def __call__(self, vertices, texture=None):
        return self.forward(vertices, texture)

    def _render_both(self, vertices, texture=None, faces=None):
        bs = vertices.shape[0]
        ts = self.tex_size
        if faces is None:
            faces = self._batched_faces(bs)
        uniform = texture is None
        if texture is None:
            texture = jnp.broadcast_to(self.debug_textures()[None],
                                       (bs, self.nf, ts, ts, ts, 3))
        elif texture.ndim == 5:
            texture = jnp.broadcast_to(texture[None], (bs,) + texture.shape)

        faces_lighting = nr_vertices_to_faces(vertices, faces)
        lit = nr_lighting(faces_lighting, texture,
                          self.light_intensity_ambient,
                          self.light_intensity_directional,
                          self.light_color_ambient,
                          self.light_color_directional,
                          self.light_direction)
        vertices_cam = nr_look_at(vertices, self.eye)
        face_verts = nr_vertices_to_faces(vertices_cam, faces)
        return rasterize_pallas(face_verts, lit,
                                image_size=self.image_size,
                                anti_aliasing=self.anti_aliasing,
                                near=self.near, far=self.far,
                                eps=self.rasterizer_eps,
                                background_color=self.background_color,
                                tex_size=self.tex_size,
                                uniform_texture=uniform,
                                silhouette_only=False,
                                tile_rows=self.tile_rows)

    def render(self, vertices, texture=None, faces=None):
        img, _ = self._render_both(vertices, texture, faces)
        return img

    def render_silhouettes(self, vertices, faces=None):
        bs = vertices.shape[0]
        if faces is None:
            faces = self._batched_faces(bs)
        vertices_cam = nr_look_at(vertices, self.eye)
        face_verts = nr_vertices_to_faces(vertices_cam, faces)
        return rasterize_pallas(face_verts, None,
                                image_size=self.image_size,
                                anti_aliasing=self.anti_aliasing,
                                near=self.near, far=self.far,
                                eps=self.rasterizer_eps,
                                background_color=self.background_color,
                                tex_size=self.tex_size,
                                uniform_texture=True,
                                silhouette_only=True,
                                tile_rows=self.tile_rows)


# ----------------- demo -----------------

if __name__ == "__main__":
    key = jax.random.PRNGKey(0)
    k1, k2 = jax.random.split(key)
    B = 2
    image_size = 32          # small demo size (module default 256)
    tex_size = 3

    # Small octahedron mesh: 6 vertices, 8 triangular faces.
    verts_base = jnp.array(
        [[0.6, 0.0, 0.0], [-0.6, 0.0, 0.0],
         [0.0, 0.6, 0.0], [0.0, -0.6, 0.0],
         [0.0, 0.0, 0.6], [0.0, 0.0, -0.6]], jnp.float32)
    faces = jnp.array(
        [[0, 2, 4], [2, 1, 4], [1, 3, 4], [3, 0, 4],
         [2, 0, 5], [1, 2, 5], [3, 1, 5], [0, 3, 5]], jnp.int32)

    jitter = 0.05 * jax.random.normal(k1, (B, verts_base.shape[0], 3), jnp.float32)
    vertices = verts_base[None, :, :] + jitter                 # (B, 6, 3)

    # tile_rows=16 -> 4 row bands at the 2x super-sampled resolution (exercises tiling + binning)
    renderer = SMPLRendererPallas(faces, image_size=image_size, tex_size=tex_size,
                                  tile_rows=16)

    # forward(): single rasterization pass, debug ones texture -> uniform (texel-free) path
    imgs, sils = renderer(vertices)

    # silhouette-only kernel mode
    sils2 = renderer.render_silhouettes(vertices)

    # textured path: pruned nearest-texel select kernel with a random texture
    rand_tex = jax.random.uniform(k2, (faces.shape[0], tex_size, tex_size, tex_size, 3),
                                  jnp.float32)
    imgs_tex = renderer.render(vertices, texture=rand_tex)

    jax.block_until_ready((imgs, sils, sils2, imgs_tex))

    assert imgs.shape == (B, 3, image_size, image_size), imgs.shape
    assert sils.shape == (B, image_size, image_size), sils.shape
    assert sils2.shape == (B, image_size, image_size), sils2.shape
    assert imgs_tex.shape == (B, 3, image_size, image_size), imgs_tex.shape
    assert imgs.dtype == jnp.float32 and sils.dtype == jnp.float32
    assert bool(jnp.all(jnp.isfinite(imgs)))
    assert bool(jnp.all(jnp.isfinite(sils)))
    assert bool(jnp.all(jnp.isfinite(sils2)))
    assert bool(jnp.all(jnp.isfinite(imgs_tex)))
    assert float(jnp.min(sils)) >= 0.0 and float(jnp.max(sils)) <= 1.0
    assert float(jnp.sum(sils)) > 0.0                      # the mesh projects onto the image
    assert float(jnp.max(jnp.abs(sils - sils2))) < 1e-5    # sil-only kernel matches full pass
    print("KERNEL_OK")
</pallas_src>

<mosaic_0001>
module attributes {stable_mosaic.version = 11 : i64} {
  func.func @_raster_kernel(%arg0: i32, %arg1: i32, %arg2: memref<8xi32, #tpu.memory_space<smem>>, %arg3: memref<64xi32, #tpu.memory_space<smem>>, %arg4: memref<12x16xf32, #tpu.memory_space<smem>>, %arg5: memref<8x16xf32, #tpu.memory_space<vmem>>, %arg6: memref<64x32xf32, #tpu.memory_space<vmem>>, %arg7: memref<1x8x128xf32, #tpu.memory_space<vmem>>, %arg8: memref<16x64xf32, #tpu.memory_space<vmem>>, %arg9: memref<16x64xf32, #tpu.memory_space<vmem>>, %arg10: memref<16x64xf32, #tpu.memory_space<vmem>>, %arg11: memref<16x64xf32, #tpu.memory_space<vmem>>) attributes {dimension_semantics = [#tpu.dimension_semantics<parallel>, #tpu.dimension_semantics<parallel>], iteration_bounds = array<i64: 2, 4>, scalar_prefetch = 0 : i64, scratch_operands = 4 : i64, tpu.core_type = #tpu.core_type<tc>, window_params = [{transform_indices = @transform_0, window_bounds = array<i64: 8>}, {transform_indices = @transform_1, window_bounds = array<i64: 64>}, {transform_indices = @transform_2, window_bounds = array<i64: 12, 16>}, {pipeline_mode = #tpu.pipeline_mode<synchronous>, transform_indices = @transform_3, window_bounds = array<i64: 8, 16>}, {pipeline_mode = #tpu.pipeline_mode<synchronous>, transform_indices = @transform_4, window_bounds = array<i64: 64, 32>}, {transform_indices = @transform_5, window_bounds = array<i64: 1, 8, 128>}]} {
    %c16_i32 = arith.constant 16 : i32
    %0 = arith.muli %arg1, %c16_i32 : i32
    %1 = tpu.iota {dimensions = array<i32: 0>} : vector<16x64xi32>
    %2 = tpu.iota {dimensions = array<i32: 1>} : vector<16x64xi32>
    %3 = vector.broadcast %0 : i32 to vector<16x64xi32>
    %4 = arith.addi %1, %3 : vector<16x64xi32>
    %5 = arith.sitofp %4 : vector<16x64xi32> to vector<16x64xf32>
    %6 = arith.sitofp %2 : vector<16x64xi32> to vector<16x64xf32>
    %cst = arith.constant 6.300000e+01 : f32
    %7 = vector.broadcast %cst : f32 to vector<16x64xf32>
    %8 = arith.subf %7, %5 : vector<16x64xf32>
    %cst_0 = arith.constant 2.000000e+00 : f32
    %9 = vector.broadcast %cst_0 : f32 to vector<16x64xf32>
    %10 = arith.mulf %9, %8 : vector<16x64xf32>
    %cst_1 = arith.constant 1.000000e+00 : f32
    %11 = vector.broadcast %cst_1 : f32 to vector<16x64xf32>
    %12 = arith.addf %10, %11 : vector<16x64xf32>
    %cst_2 = arith.constant 6.400000e+01 : f32
    %13 = vector.broadcast %cst_2 : f32 to vector<16x64xf32>
    %14 = arith.subf %12, %13 : vector<16x64xf32>
    %cst_3 = arith.constant 1.562500e-02 : f32
    %15 = vector.broadcast %cst_3 : f32 to vector<16x64xf32>
    %16 = arith.mulf %14, %15 : vector<16x64xf32>
    %cst_4 = arith.constant 2.000000e+00 : f32
    %17 = vector.broadcast %cst_4 : f32 to vector<16x64xf32>
    %18 = arith.mulf %17, %6 : vector<16x64xf32>
    %cst_5 = arith.constant 1.000000e+00 : f32
    %19 = vector.broadcast %cst_5 : f32 to vector<16x64xf32>
    %20 = arith.addf %18, %19 : vector<16x64xf32>
    %cst_6 = arith.constant 6.400000e+01 : f32
    %21 = vector.broadcast %cst_6 : f32 to vector<16x64xf32>
    %22 = arith.subf %20, %21 : vector<16x64xf32>
    %cst_7 = arith.constant 1.562500e-02 : f32
    %23 = vector.broadcast %cst_7 : f32 to vector<16x64xf32>
    %24 = arith.mulf %22, %23 : vector<16x64xf32>
    %cst_8 = arith.constant 2.500000e+01 : f32
    %25 = vector.broadcast %cst_8 : f32 to vector<16x64xf32>
    %c0 = arith.constant 0 : index
    %c0_9 = arith.constant 0 : index
    %26 = vector.load %arg8[%c0, %c0_9] : memref<16x64xf32, #tpu.memory_space<vmem>>, vector<16x64xf32>
    tpu.vector_store %arg8[%c0, %c0_9], %25 {strides = array<i32>} : memref<16x64xf32, #tpu.memory_space<vmem>>, vector<16x64xf32>,
    %cst_10 = arith.constant 0.000000e+00 : f32
    %27 = vector.broadcast %cst_10 : f32 to vector<16x64xf32>
    %c0_11 = arith.constant 0 : index
    %c0_12 = arith.constant 0 : index
    %28 = vector.load %arg9[%c0_11, %c0_12] : memref<16x64xf32, #tpu.memory_space<vmem>>, vector<16x64xf32>
    tpu.vector_store %arg9[%c0_11, %c0_12], %27 {strides = array<i32>} : memref<16x64xf32, #tpu.memory_space<vmem>>, vector<16x64xf32>,
    %cst_13 = arith.constant 0.000000e+00 : f32
    %29 = vector.broadcast %cst_13 : f32 to vector<16x64xf32>
    %c0_14 = arith.constant 0 : index
    %c0_15 = arith.constant 0 : index
    %30 = vector.load %arg10[%c0_14, %c0_15] : memref<16x64xf32, #tpu.memory_space<vmem>>, vector<16x64xf32>
    tpu.vector_store %arg10[%c0_14, %c0_15], %29 {strides = array<i32>} : memref<16x64xf32, #tpu.memory_space<vmem>>, vector<16x64xf32>,
    %cst_16 = arith.constant 0.000000e+00 : f32
    %31 = vector.broadcast %cst_16 : f32 to vector<16x64xf32>
    %c0_17 = arith.constant 0 : index
    %c0_18 = arith.constant 0 : index
    %32 = vector.load %arg11[%c0_17, %c0_18] : memref<16x64xf32, #tpu.memory_space<vmem>>, vector<16x64xf32>
    tpu.vector_store %arg11[%c0_17, %c0_18], %31 {strides = array<i32>} : memref<16x64xf32, #tpu.memory_space<vmem>>, vector<16x64xf32>,
    %c4_i32 = arith.constant 4 : i32
    %33 = arith.muli %arg0, %c4_i32 : i32
    %34 = arith.addi %33, %arg1 : i32
    %35 = arith.index_cast %34 : i32 to index
    %36 = memref.load %arg2[%35] : memref<8xi32, #tpu.memory_space<smem>>
    %c0_i32 = arith.constant 0 : i32
    %c0_i32_19 = arith.constant 0 : i32
    %37 = arith.subi %36, %c0_i32_19 : i32
    %38 = arith.addi %c0_i32_19, %37 : i32
    %c1_i32 = arith.constant 1 : i32
    scf.for %arg12 = %c0_i32_19 to %38 step %c1_i32  : i32 {
      %c8_i32 = arith.constant 8 : i32
      %75 = arith.muli %34, %c8_i32 : i32
      %76 = arith.addi %75, %arg12 : i32
      %77 = arith.index_cast %76 : i32 to index
      %78 = memref.load %arg3[%77] : memref<64xi32, #tpu.memory_space<smem>>
      %c8_i32_62 = arith.constant 8 : i32
      %79 = arith.muli %arg0, %c8_i32_62 : i32
      %80 = arith.addi %79, %78 : i32
      %c0_63 = arith.constant 0 : index
      %81 = arith.index_cast %80 : i32 to index
      %82 = memref.load %arg4[%c0_63, %81] : memref<12x16xf32, #tpu.memory_space<smem>>
      %c1 = arith.constant 1 : index
      %83 = arith.index_cast %80 : i32 to index
      %84 = memref.load %arg4[%c1, %83] : memref<12x16xf32, #tpu.memory_space<smem>>
      %c2 = arith.constant 2 : index
      %85 = arith.index_cast %80 : i32 to index
      %86 = memref.load %arg4[%c2, %85] : memref<12x16xf32, #tpu.memory_space<smem>>
      %c3 = arith.constant 3 : index
      %87 = arith.index_cast %80 : i32 to index
      %88 = memref.load %arg4[%c3, %87] : memref<12x16xf32, #tpu.memory_space<smem>>
      %c4 = arith.constant 4 : index
      %89 = arith.index_cast %80 : i32 to index
      %90 = memref.load %arg4[%c4, %89] : memref<12x16xf32, #tpu.memory_space<smem>>
      %c5 = arith.constant 5 : index
      %91 = arith.index_cast %80 : i32 to index
      %92 = memref.load %arg4[%c5, %91] : memref<12x16xf32, #tpu.memory_space<smem>>
      %c6 = arith.constant 6 : index
      %93 = arith.index_cast %80 : i32 to index
      %94 = memref.load %arg4[%c6, %93] : memref<12x16xf32, #tpu.memory_space<smem>>
      %c7 = arith.constant 7 : index
      %95 = arith.index_cast %80 : i32 to index
      %96 = memref.load %arg4[%c7, %95] : memref<12x16xf32, #tpu.memory_space<smem>>
      %c8 = arith.constant 8 : index
      %97 = arith.index_cast %80 : i32 to index
      %98 = memref.load %arg4[%c8, %97] : memref<12x16xf32, #tpu.memory_space<smem>>
      %99 = vector.broadcast %82 : f32 to vector<16x64xf32>
      %100 = arith.mulf %99, %24 : vector<16x64xf32>
      %101 = vector.broadcast %84 : f32 to vector<16x64xf32>
      %102 = arith.mulf %101, %16 : vector<16x64xf32>
      %103 = arith.addf %100, %102 : vector<16x64xf32>
      %104 = vector.broadcast %86 : f32 to vector<16x64xf32>
      %105 = arith.addf %103, %104 : vector<16x64xf32>
      %106 = vector.broadcast %88 : f32 to vector<16x64xf32>
      %107 = arith.mulf %106, %24 : vector<16x64xf32>
      %108 = vector.broadcast %90 : f32 to vector<16x64xf32>
      %109 = arith.mulf %108, %16 : vector<16x64xf32>
      %110 = arith.addf %107, %109 : vector<16x64xf32>
      %111 = vector.broadcast %92 : f32 to vector<16x64xf32>
      %112 = arith.addf %110, %111 : vector<16x64xf32>
      %cst_64 = arith.constant 1.000000e+00 : f32
      %113 = vector.broadcast %cst_64 : f32 to vector<16x64xf32>
      %114 = arith.subf %113, %105 : vector<16x64xf32>
      %115 = arith.subf %114, %112 : vector<16x64xf32>
      %cst_65 = arith.constant 0.000000e+00 : f32
      %116 = vector.broadcast %cst_65 : f32 to vector<16x64xf32>
      %117 = arith.cmpf oge, %105, %116 : vector<16x64xf32>
      %cst_66 = arith.constant 0.000000e+00 : f32
      %118 = vector.broadcast %cst_66 : f32 to vector<16x64xf32>
      %119 = arith.cmpf oge, %112, %118 : vector<16x64xf32>
      %120 = arith.andi %117, %119 : vector<16x64xi1>
      %cst_67 = arith.constant 0.000000e+00 : f32
      %121 = vector.broadcast %cst_67 : f32 to vector<16x64xf32>
      %122 = arith.cmpf oge, %115, %121 : vector<16x64xf32>
      %123 = arith.andi %120, %122 : vector<16x64xi1>
      %cst_68 = arith.constant 0.000000e+00 : f32
      %cst_69 = arith.constant 1.000000e+00 : f32
      %124 = vector.broadcast %cst_68 : f32 to vector<16x64xf32>
      %125 = arith.maximumf %124, %105 : vector<16x64xf32>
      %126 = vector.broadcast %cst_69 : f32 to vector<16x64xf32>
      %127 = arith.minimumf %126, %125 : vector<16x64xf32>
      %cst_70 = arith.constant 0.000000e+00 : f32
      %cst_71 = arith.constant 1.000000e+00 : f32
      %128 = vector.broadcast %cst_70 : f32 to vector<16x64xf32>
      %129 = arith.maximumf %128, %112 : vector<16x64xf32>
      %130 = vector.broadcast %cst_71 : f32 to vector<16x64xf32>
      %131 = arith.minimumf %130, %129 : vector<16x64xf32>
      %cst_72 = arith.constant 0.000000e+00 : f32
      %cst_73 = arith.constant 1.000000e+00 : f32
      %132 = vector.broadcast %cst_72 : f32 to vector<16x64xf32>
      %133 = arith.maximumf %132, %115 : vector<16x64xf32>
      %134 = vector.broadcast %cst_73 : f32 to vector<16x64xf32>
      %135 = arith.minimumf %134, %133 : vector<16x64xf32>
      %136 = arith.addf %127, %131 : vector<16x64xf32>
      %137 = arith.addf %136, %135 : vector<16x64xf32>
      %cst_74 = arith.constant 1.000000e-03 : f32
      %138 = vector.broadcast %cst_74 : f32 to vector<16x64xf32>
      %139 = arith.maximumf %137, %138 : vector<16x64xf32>
      %140 = tpu.reciprocal %139 {approx = true} : vector<16x64xf32> -> vector<16x64xf32>
      %141 = arith.mulf %139, %140 : vector<16x64xf32>
      %cst_75 = arith.constant 2.000000e+00 : f32
      %142 = vector.broadcast %cst_75 : f32 to vector<16x64xf32>
      %143 = arith.subf %142, %141 : vector<16x64xf32>
      %144 = arith.mulf %140, %143 : vector<16x64xf32>
      %145 = arith.mulf %127, %144 : vector<16x64xf32>
      %146 = arith.mulf %131, %144 : vector<16x64xf32>
      %147 = arith.mulf %135, %144 : vector<16x64xf32>
      %148 = vector.broadcast %94 : f32 to vector<16x64xf32>
      %149 = arith.mulf %145, %148 : vector<16x64xf32>
      %150 = vector.broadcast %96 : f32 to vector<16x64xf32>
      %151 = arith.mulf %146, %150 : vector<16x64xf32>
      %152 = arith.addf %149, %151 : vector<16x64xf32>
      %153 = vector.broadcast %98 : f32 to vector<16x64xf32>
      %154 = arith.mulf %147, %153 : vector<16x64xf32>
      %155 = arith.addf %152, %154 : vector<16x64xf32>
      %cst_76 = arith.constant 9.99999993E-9 : f32
      %156 = vector.broadcast %cst_76 : f32 to vector<16x64xf32>
      %157 = arith.maximumf %155, %156 : vector<16x64xf32>
      %158 = tpu.reciprocal %157 {approx = true} : vector<16x64xf32> -> vector<16x64xf32>
      %159 = arith.mulf %157, %158 : vector<16x64xf32>
      %cst_77 = arith.constant 2.000000e+00 : f32
      %160 = vector.broadcast %cst_77 : f32 to vector<16x64xf32>
      %161 = arith.subf %160, %159 : vector<16x64xf32>
      %162 = arith.mulf %158, %161 : vector<16x64xf32>
      %c0_78 = arith.constant 0 : index
      %c0_79 = arith.constant 0 : index
      %163 = vector.load %arg8[%c0_78, %c0_79] : memref<16x64xf32, #tpu.memory_space<vmem>>, vector<16x64xf32>
      %cst_80 = arith.constant 1.000000e-01 : f32
      %164 = vector.broadcast %cst_80 : f32 to vector<16x64xf32>
      %165 = arith.cmpf ogt, %162, %164 : vector<16x64xf32>
      %166 = arith.andi %123, %165 : vector<16x64xi1>
      %cst_81 = arith.constant 2.500000e+01 : f32
      %167 = vector.broadcast %cst_81 : f32 to vector<16x64xf32>
      %168 = arith.cmpf olt, %162, %167 : vector<16x64xf32>
      %169 = arith.andi %166, %168 : vector<16x64xi1>
      %170 = arith.cmpf olt, %162, %163 : vector<16x64xf32>
      %171 = arith.andi %169, %170 : vector<16x64xi1>
      %172 = arith.select %171, %162, %163 : vector<16x64xi1>, vector<16x64xf32>
      %c0_82 = arith.constant 0 : index
      %c0_83 = arith.constant 0 : index
      %173 = vector.load %arg8[%c0_82, %c0_83] : memref<16x64xf32, #tpu.memory_space<vmem>>, vector<16x64xf32>
      tpu.vector_store %arg8[%c0_82, %c0_83], %172 {strides = array<i32>} : memref<16x64xf32, #tpu.memory_space<vmem>>, vector<16x64xf32>,
      %c9 = arith.constant 9 : index
      %174 = arith.index_cast %80 : i32 to index
      %175 = memref.load %arg4[%c9, %174] : memref<12x16xf32, #tpu.memory_space<smem>>
      %c10 = arith.constant 10 : index
      %176 = arith.index_cast %80 : i32 to index
      %177 = memref.load %arg4[%c10, %176] : memref<12x16xf32, #tpu.memory_space<smem>>
      %c11 = arith.constant 11 : index
      %178 = arith.index_cast %80 : i32 to index
      %179 = memref.load %arg4[%c11, %178] : memref<12x16xf32, #tpu.memory_space<smem>>
      %c0_84 = arith.constant 0 : index
      %c0_85 = arith.constant 0 : index
      %180 = vector.load %arg9[%c0_84, %c0_85] : memref<16x64xf32, #tpu.memory_space<vmem>>, vector<16x64xf32>
      %181 = vector.broadcast %175 : f32 to vector<16x64xf32>
      %182 = arith.select %171, %181, %180 : vector<16x64xi1>, vector<16x64xf32>
      %c0_86 = arith.constant 0 : index
      %c0_87 = arith.constant 0 : index
      %183 = vector.load %arg9[%c0_86, %c0_87] : memref<16x64xf32, #tpu.memory_space<vmem>>, vector<16x64xf32>
      tpu.vector_store %arg9[%c0_86, %c0_87], %182 {strides = array<i32>} : memref<16x64xf32, #tpu.memory_space<vmem>>, vector<16x64xf32>,
      %c0_88 = arith.constant 0 : index
      %c0_89 = arith.constant 0 : index
      %184 = vector.load %arg10[%c0_88, %c0_89] : memref<16x64xf32, #tpu.memory_space<vmem>>, vector<16x64xf32>
      %185 = vector.broadcast %177 : f32 to vector<16x64xf32>
      %186 = arith.select %171, %185, %184 : vector<16x64xi1>, vector<16x64xf32>
      %c0_90 = arith.constant 0 : index
      %c0_91 = arith.constant 0 : index
      %187 = vector.load %arg10[%c0_90, %c0_91] : memref<16x64xf32, #tpu.memory_space<vmem>>, vector<16x64xf32>
      tpu.vector_store %arg10[%c0_90, %c0_91], %186 {strides = array<i32>} : memref<16x64xf32, #tpu.memory_space<vmem>>, vector<16x64xf32>,
      %c0_92 = arith.constant 0 : index
      %c0_93 = arith.constant 0 : index
      %188 = vector.load %arg11[%c0_92, %c0_93] : memref<16x64xf32, #tpu.memory_space<vmem>>, vector<16x64xf32>
      %189 = vector.broadcast %179 : f32 to vector<16x64xf32>
      %190 = arith.select %171, %189, %188 : vector<16x64xi1>, vector<16x64xf32>
      %c0_94 = arith.constant 0 : index
      %c0_95 = arith.constant 0 : index
      %191 = vector.load %arg11[%c0_94, %c0_95] : memref<16x64xf32, #tpu.memory_space<vmem>>, vector<16x64xf32>
      tpu.vector_store %arg11[%c0_94, %c0_95], %190 {strides = array<i32>} : memref<16x64xf32, #tpu.memory_space<vmem>>, vector<16x64xf32>,
    }
    %c0_20 = arith.constant 0 : index
    %c0_21 = arith.constant 0 : index
    %39 = vector.load %arg8[%c0_20, %c0_21] : memref<16x64xf32, #tpu.memory_space<vmem>>, vector<16x64xf32>
    %cst_22 = arith.constant 2.500000e+01 : f32
    %40 = vector.broadcast %cst_22 : f32 to vector<16x64xf32>
    %41 = arith.cmpf olt, %39, %40 : vector<16x64xf32>
    %42 = arith.extui %41 : vector<16x64xi1> to vector<16x64xi32>
    %43 = arith.sitofp %42 : vector<16x64xi32> to vector<16x64xf32>
    %c0_23 = arith.constant 0 : index
    %c0_24 = arith.constant 0 : index
    %44 = vector.load %arg9[%c0_23, %c0_24] : memref<16x64xf32, #tpu.memory_space<vmem>>, vector<16x64xf32>
    %c0_25 = arith.constant 0 : index
    %c0_26 = arith.constant 0 : index
    %45 = vector.load %arg5[%c0_25, %c0_26] : memref<8x16xf32, #tpu.memory_space<vmem>>, vector<8x16xf32>
    %cst_27 = arith.constant dense<0.000000e+00> : vector<8x64xf32>
    %46 = tpu.matmul %45, %44, %cst_27 {dimension_numbers = #tpu.dot_dimension_numbers<[1], [0], [0], [1], [0, 0, 1, 1], [], []>} : vector<8x16xf32>, vector<16x64xf32>, vector<8x64xf32> -> vector<8x64xf32>
    %c0_28 = arith.constant 0 : index
    %c0_29 = arith.constant 0 : index
    %47 = vector.load %arg6[%c0_28, %c0_29] : memref<64x32xf32, #tpu.memory_space<vmem>>, vector<64x32xf32>
    %cst_30 = arith.constant dense<0.000000e+00> : vector<8x32xf32>
    %48 = tpu.matmul %46, %47, %cst_30 {dimension_numbers = #tpu.dot_dimension_numbers<[1], [0], [0], [1], [0, 0, 1, 1], [], []>} : vector<8x64xf32>, vector<64x32xf32>, vector<8x32xf32> -> vector<8x32xf32>
    %c0_31 = arith.constant 0 : index
    %c0_32 = arith.constant 0 : index
    %c0_33 = arith.constant 0 : index
    %49 = vector.load %arg7[%c0_31, %c0_32, %c0_33] : memref<1x8x128xf32, #tpu.memory_space<vmem>>, vector<1x8x32xf32>
    %50 = vector.shape_cast %49 : vector<1x8x32xf32> to vector<8x32xf32>
    %51 = vector.shape_cast %48 : vector<8x32xf32> to vector<1x8x32xf32>
    tpu.vector_store %arg7[%c0_31, %c0_32, %c0_33], %51 {strides = array<i32>} : memref<1x8x128xf32, #tpu.memory_space<vmem>>, vector<1x8x32xf32>,
    %c0_34 = arith.constant 0 : index
    %c0_35 = arith.constant 0 : index
    %52 = vector.load %arg10[%c0_34, %c0_35] : memref<16x64xf32, #tpu.memory_space<vmem>>, vector<16x64xf32>
    %c0_36 = arith.constant 0 : index
    %c0_37 = arith.constant 0 : index
    %53 = vector.load %arg5[%c0_36, %c0_37] : memref<8x16xf32, #tpu.memory_space<vmem>>, vector<8x16xf32>
    %cst_38 = arith.constant dense<0.000000e+00> : vector<8x64xf32>
    %54 = tpu.matmul %53, %52, %cst_38 {dimension_numbers = #tpu.dot_dimension_numbers<[1], [0], [0], [1], [0, 0, 1, 1], [], []>} : vector<8x16xf32>, vector<16x64xf32>, vector<8x64xf32> -> vector<8x64xf32>
    %c0_39 = arith.constant 0 : index
    %c0_40 = arith.constant 0 : index
    %55 = vector.load %arg6[%c0_39, %c0_40] : memref<64x32xf32, #tpu.memory_space<vmem>>, vector<64x32xf32>
    %cst_41 = arith.constant dense<0.000000e+00> : vector<8x32xf32>
    %56 = tpu.matmul %54, %55, %cst_41 {dimension_numbers = #tpu.dot_dimension_numbers<[1], [0], [0], [1], [0, 0, 1, 1], [], []>} : vector<8x64xf32>, vector<64x32xf32>, vector<8x32xf32> -> vector<8x32xf32>
    %c0_42 = arith.constant 0 : index
    %c0_43 = arith.constant 0 : index
    %c32 = arith.constant 32 : index
    %57 = vector.load %arg7[%c0_42, %c0_43, %c32] : memref<1x8x128xf32, #tpu.memory_space<vmem>>, vector<1x8x32xf32>
    %58 = vector.shape_cast %57 : vector<1x8x32xf32> to vector<8x32xf32>
    %59 = vector.shape_cast %56 : vector<8x32xf32> to vector<1x8x32xf32>
    tpu.vector_store %arg7[%c0_42, %c0_43, %c32], %59 {strides = array<i32>} : memref<1x8x128xf32, #tpu.memory_space<vmem>>, vector<1x8x32xf32>,
    %c0_44 = arith.constant 0 : index
    %c0_45 = arith.constant 0 : index
    %60 = vector.load %arg11[%c0_44, %c0_45] : memref<16x64xf32, #tpu.memory_space<vmem>>, vector<16x64xf32>
    %c0_46 = arith.constant 0 : index
    %c0_47 = arith.constant 0 : index
    %61 = vector.load %arg5[%c0_46, %c0_47] : memref<8x16xf32, #tpu.memory_space<vmem>>, vector<8x16xf32>
    %cst_48 = arith.constant dense<0.000000e+00> : vector<8x64xf32>
    %62 = tpu.matmul %61, %60, %cst_48 {dimension_numbers = #tpu.dot_dimension_numbers<[1], [0], [0], [1], [0, 0, 1, 1], [], []>} : vector<8x16xf32>, vector<16x64xf32>, vector<8x64xf32> -> vector<8x64xf32>
    %c0_49 = arith.constant 0 : index
    %c0_50 = arith.constant 0 : index
    %63 = vector.load %arg6[%c0_49, %c0_50] : memref<64x32xf32, #tpu.memory_space<vmem>>, vector<64x32xf32>
    %cst_51 = arith.constant dense<0.000000e+00> : vector<8x32xf32>
    %64 = tpu.matmul %62, %63, %cst_51 {dimension_numbers = #tpu.dot_dimension_numbers<[1], [0], [0], [1], [0, 0, 1, 1], [], []>} : vector<8x64xf32>, vector<64x32xf32>, vector<8x32xf32> -> vector<8x32xf32>
    %c0_52 = arith.constant 0 : index
    %c0_53 = arith.constant 0 : index
    %c64 = arith.constant 64 : index
    %65 = vector.load %arg7[%c0_52, %c0_53, %c64] : memref<1x8x128xf32, #tpu.memory_space<vmem>>, vector<1x8x32xf32>
    %66 = vector.shape_cast %65 : vector<1x8x32xf32> to vector<8x32xf32>
    %67 = vector.shape_cast %64 : vector<8x32xf32> to vector<1x8x32xf32>
    tpu.vector_store %arg7[%c0_52, %c0_53, %c64], %67 {strides = array<i32>} : memref<1x8x128xf32, #tpu.memory_space<vmem>>, vector<1x8x32xf32>,
    %c0_54 = arith.constant 0 : index
    %c0_55 = arith.constant 0 : index
    %68 = vector.load %arg5[%c0_54, %c0_55] : memref<8x16xf32, #tpu.memory_space<vmem>>, vector<8x16xf32>
    %cst_56 = arith.constant dense<0.000000e+00> : vector<8x64xf32>
    %69 = tpu.matmul %68, %43, %cst_56 {dimension_numbers = #tpu.dot_dimension_numbers<[1], [0], [0], [1], [0, 0, 1, 1], [], []>} : vector<8x16xf32>, vector<16x64xf32>, vector<8x64xf32> -> vector<8x64xf32>
    %c0_57 = arith.constant 0 : index
    %c0_58 = arith.constant 0 : index
    %70 = vector.load %arg6[%c0_57, %c0_58] : memref<64x32xf32, #tpu.memory_space<vmem>>, vector<64x32xf32>
    %cst_59 = arith.constant dense<0.000000e+00> : vector<8x32xf32>
    %71 = tpu.matmul %69, %70, %cst_59 {dimension_numbers = #tpu.dot_dimension_numbers<[1], [0], [0], [1], [0, 0, 1, 1], [], []>} : vector<8x64xf32>, vector<64x32xf32>, vector<8x32xf32> -> vector<8x32xf32>
    %c0_60 = arith.constant 0 : index
    %c0_61 = arith.constant 0 : index
    %c96 = arith.constant 96 : index
    %72 = vector.load %arg7[%c0_60, %c0_61, %c96] : memref<1x8x128xf32, #tpu.memory_space<vmem>>, vector<1x8x32xf32>
    %73 = vector.shape_cast %72 : vector<1x8x32xf32> to vector<8x32xf32>
    %74 = vector.shape_cast %71 : vector<8x32xf32> to vector<1x8x32xf32>
    tpu.vector_store %arg7[%c0_60, %c0_61, %c96], %74 {strides = array<i32>} : memref<1x8x128xf32, #tpu.memory_space<vmem>>, vector<1x8x32xf32>,
    return
  }
  func.func @transform_0(%arg0: i32, %arg1: i32) -> i32 {
    %c0_i32 = arith.constant 0 : i32
    %c0_i32_0 = arith.constant 0 : i32
    return %c0_i32 : i32
  }
  func.func @transform_1(%arg0: i32, %arg1: i32) -> i32 {
    %c0_i32 = arith.constant 0 : i32
    %c0_i32_0 = arith.constant 0 : i32
    return %c0_i32 : i32
  }
  func.func @transform_2(%arg0: i32, %arg1: i32) -> (i32, i32) {
    %c0_i32 = arith.constant 0 : i32
    %c0_i32_0 = arith.constant 0 : i32
    %c0_i32_1 = arith.constant 0 : i32
    return %c0_i32, %c0_i32_0 : i32, i32
  }
  func.func @transform_3(%arg0: i32, %arg1: i32) -> (i32, i32) {
    %c0_i32 = arith.constant 0 : i32
    %c0_i32_0 = arith.constant 0 : i32
    %c0_i32_1 = arith.constant 0 : i32
    return %c0_i32, %c0_i32_0 : i32, i32
  }
  func.func @transform_4(%arg0: i32, %arg1: i32) -> (i32, i32) {
    %c0_i32 = arith.constant 0 : i32
    %c0_i32_0 = arith.constant 0 : i32
    %c0_i32_1 = arith.constant 0 : i32
    return %c0_i32, %c0_i32_0 : i32, i32
  }
  func.func @transform_5(%arg0: i32, %arg1: i32) -> (i32, i32, i32) {
    %c0_i32 = arith.constant 0 : i32
    %c0_i32_0 = arith.constant 0 : i32
    return %arg0, %arg1, %c0_i32 : i32, i32, i32
  }
}

</mosaic_0001>

<bundles_post_ra>
// kernel: tpu_custom_call.1
= control target key start
LH: loop header
LB: loop body
LE: loop exit
PB: predicated region body
PF: predicated region fallthrough
CT: control target
= control target key end

     0   :  { %s2263_s0 = inlined_call_operand.vmem [shape: s32[8], index: 0, kind: input, shape index: {}]   ;;  %s2264_s1 = inlined_call_operand.vmem [shape: s32[64], index: 1, kind: input, shape index: {}]   ;;  %s2265_s2 = inlined_call_operand.vmem [shape: f32[12,16], index: 2, kind: input, shape index: {}]   ;;  %s2266_s3 = inlined_call_operand.vmem [shape: f32[8,16], index: 3, kind: input, shape index: {}]   ;;  %s2267_s4 = inlined_call_operand.vmem [shape: f32[64,32], index: 4, kind: input, shape index: {}]   ;;  %s2268_s5 = inlined_call_operand.hbm [shape: f32[2,32,128], index: 5, kind: output, shape index: {}]  }
   0x1   :  { %2279 = sst [smem:[#allocation22_spill]] %s2263_s0 }
   0x2   :  { %2280 = sst [smem:[#allocation23_spill]] %s2264_s1 }
   0x3   :  { %2281 = sst [smem:[#allocation24_spill]] %s2265_s2 }
   0x4   :  { %10 = vsyncpa [#allocation8], 0 }
   0x5   :  { %11 = vsyncpa [#allocation10], 0 }
   0x6   :  { %12 = vsyncpa [#allocation7], 0 }
   0x7   :  { %14 = vsyncpa [#allocation7 + $0x1], 0  ;;  %s1797_s18 = smov 0   ;;  %s1799_s19 = smov 0  }
   0x8   :  { %s1801_s20 = smov 0   ;;  %s1803_s21 = smov 0  }
   0x9   :  { %s1805_s22 = smov 0   ;;  %s1807_s23 = smov 0  }
   0xa   :  { %s1809_s24 = smov 0   ;;  %s1811_s25 = smov 0  }
   0xb LB: > { %2282 = sst [smem:[#allocation16_spill]] %s1736_s22  ;;  %s1251_s26 = sadd.s32 4294967295, %s1748_s25   ;;  %s1748_s25 = sphi %s1811_s25, %s20_s25   ;;  %s1744_s24 = sphi %s1809_s24, %s2308_s24   ;;  %s1740_s23 = sphi %s1807_s23, %s2307_s23   ;;  %s1736_s22 = sphi %s1805_s22, %s2306_s22   ;;  %s1732_s21 = sphi %s1803_s21, %s2305_s21   ;;  %s1728_s20 = sphi %s1801_s20, %s2311_s20   ;;  %s1724_s19 = sphi %s1799_s19, %s2310_s19   ;;  %s1720_s18 = sphi %s1797_s18, %s2309_s18  }
   0xc   : > { %2283 = sst [smem:[#allocation17_spill]] %s1740_s23  ;;  %s1252_s27 = sadd.s32 4294967294, %s1748_s25  }
   0xd   : > { %2284 = sst [smem:[#allocation18_spill]] %s1744_s24  ;;  %s29_s28 = sadd.s32 1, %s1740_s23 }
   0xe   : > { %s32_s29 = sadd.s32 1, %s1744_s24  ;;  %p30_p0 = scmp.ge.s32.totalorder %s29_s28, 4 }
   0xf   : > { %s146_s30 = sadd.s32 1, %s1728_s20  ;;  %p156_p1 = scmp.ne.s32.totalorder %s1728_s20, %s1724_s19 }
  0x10   : > { %p157_p2 = scmp.eq.s32.totalorder %s1251_s26, 7  ;;  %s2313_s28 = smov (%p30_p0, %s29_s28), 0 }
  0x11   : > { %2285 = sst [smem:[#allocation19_spill]] %s2313_s28  ;;  %s2315_s29 = smov (!%p30_p0, %s32_s29), %s1744_s24 }
  0x12   : > { %s142_s6 = ssub.s32 %s1740_s23, %s2313_s28  ;;  %p1849_p3 = por %p157_p2, %p156_p1 }
  0x13   : > { %p34_p4 = scmp.ge.s32.totalorder %s2315_s29, 2  ;;  %p162_p5 = scmp.ne.s32.totalorder %s1724_s19, %s1720_s18 }
  0x14   : > { %s2286_s7 = scalar_select %p1849_p3, 1, 0 }
  0x15   : > { %p163_p6 = scmp.eq.s32.totalorder %s1252_s27, 7  ;;  %p1253_p7 = scmp.ge.s32.totalorder %s1748_s25, 1 }
  0x16   : > { %s2317_s29 = smov (%p34_p4, %s2315_s29), 0  ;;  %p170_p9 = scmp.lt.s32.totalorder %s1748_s25, 9 }
  0x17   : > { %2287 = sst [smem:[#allocation20_spill]] %s2317_s29  ;;  %p1858_p8 = por %p163_p6, %p162_p5 }
  0x18   : > { %s141_s9 = ssub.s32 %s1744_s24, %s2317_s29  ;;  %p1865_p10 = pnand %p1253_p7, %p170_p9 }
  0x19   : > { %s2288_s8 = scalar_select %p1858_p8, 1, 0 }
  0x1a   : > { %s143_s10 = sor.u32 %s142_s6, %s141_s9  ;;  %p1869_p12 = scmp.eq.s32.totalorder %s1251_s26, 0 }
  0x1b   : > { %s2289_s11 = scalar_select %p1865_p10, 1, 0 }
  0x1c   : > { %p144_p11 = scmp.eq.s32.totalorder %s143_s10, 0  ;;  %p1486_p13 = pneg %p1865_p10 }
  0x1d   : > { %s2290_s12 = scalar_select %p1869_p12, 1, 0 }
  0x1e   : > { %s2291_s1 = sld [smem:[#allocation23_spill]]  ;;  %p1883_p0 = pnand %p1869_p12, %p1486_p13 }
  0x1f   : > { %s1879_s16 = scalar_select %p144_p11, %s1728_s20, %s146_s30  }
  0x20   : > { %p1601_p2 = pneg %p1883_p0 }
  0x21   : > { %2292 = sst [smem:[#allocation21_spill]] %s1879_s16 }
  0x24   : > { %s194_s15 = sshll.u32 %s2291_s1, 4  ;;  %s195_s15 = int_to_ptr.vmem [resolvable:$true] %s194_s15 }
  0x25   : > { %s1599_s26 = scalar_lea.vmem %s195_s15, 16  ;;  %p1607_p6 = scmp.lt.s32.totalorder %s195_s15, %s195_s15 }
  0x26   : > { %p1600_p1 = scmp.ne.s32.totalorder %s195_s15, %s1599_s26  ;;  %p1608_p7 = scmp.lt.s32.totalorder %s1599_s26, %s1599_s26 }
  0x28   : > { %p1602_p4 = pnand %p1601_p2, %p1600_p1  ;;  %p1609_p9 = por %p1608_p7, %p1607_p6 }
  0x2a   : > { %p1603_p5 = pneg %p1602_p4 }
  0x2c   : > { %p1610_p11 = pnand %p1609_p9, %p1603_p5 }
  0x2e   : > { %1613 = shalt.err (!%p1610_p11)
}
  0x2f   : > { %s1754_s27 = smov [#allocation9]   ;;  %s2294_s0 = sld [smem:[#allocation22_spill]] }
  0x30   : > { %1492 = dma.vmem_to_smem (!%p1883_p0), %s195_s15, 16, %s1754_s27, [#allocation10]  }
  0x31   : > { %s2295_s2 = sld [smem:[#allocation24_spill]] }
  0x35   : > { %s183_s9 = sshll.u32 %s2294_s0, 4  ;;  %s184_s9 = int_to_ptr.vmem [resolvable:$true] %s183_s9 }
  0x36   : > { %s1614_s1 = scalar_lea.vmem %s184_s9, 16  ;;  %p1622_p5 = scmp.lt.s32.totalorder %s184_s9, %s184_s9 }
  0x37   : > { %s204_s14 = sshll.u32 %s2295_s2, 4  ;;  %p1615_p13 = scmp.ne.s32.totalorder %s184_s9, %s1614_s1  ;;  %s205_s14 = int_to_ptr.vmem [resolvable:$true] %s204_s14 }
  0x38   : > { %p1623_p6 = scmp.lt.s32.totalorder %s1614_s1, %s1614_s1 }
  0x39   : > { %p1617_p1 = pnand %p1615_p13, %p1601_p2 }
  0x3a   : > { %p1624_p7 = por %p1623_p6, %p1622_p5 }
  0x3b   : > { %p1618_p4 = pneg %p1617_p1 }
  0x3d   : > { %p1625_p9 = pnand %p1624_p7, %p1618_p4 }
  0x3f   : > { %1628 = shalt.err (!%p1625_p9)
}
  0x40   : > { %s1755_s15 = smov [#allocation6]   ;;  %s1629_s26 = scalar_lea.vmem %s205_s14, 256 }
  0x41   : > { %1489 = dma.vmem_to_smem (!%p1883_p0), %s184_s9, 16, %s1755_s15, [#allocation8]  }
  0x42   : > { %p1630_p11 = scmp.ne.s32.totalorder %s205_s14, %s1629_s26  ;;  %p1637_p12 = scmp.lt.s32.totalorder %s205_s14, %s205_s14 }
  0x43   : > { %p1638_p13 = scmp.lt.s32.totalorder %s1629_s26, %s1629_s26 }
  0x44   : > { %p1632_p8 = pnand %p1630_p11, %p1601_p2 }
  0x45   : > { %p1639_p1 = por %p1638_p13, %p1637_p12 }
  0x46   : > { %p1633_p3 = pneg %p1632_p8 }
  0x48   : > { %p1640_p10 = pnand %p1639_p1, %p1633_p3 }
  0x4a   : > { %1643 = shalt.err (!%p1640_p10)
}
  0x4b   : > { %s1756_s1 = smov [#allocation11]   ;;  %s1757_s27 = smov 128  }
  0x4c   : > { %s1758_s30 = smov 8   ;;  %p2296_p4 = scmp.ne.s32.totalorder %s2289_s11, 0 }
  0x4d   : > { %1495 = dma.vmem_to_smem (!%p1883_p0), %s205_s14, 256, %s1756_s1, [#allocation10], %s1757_s27, %s1757_s27, %s1758_s30  }
  0x4e   : > { %226 = sbr.rel (%p2296_p4) target bundleno = 930 (0x3a2), region = 40  ;;  %p2297_p5 = scmp.ne.s32.totalorder (!%p2296_p4), %s2290_s12, 0 }
  0x53   : > { %1707 = dma.done.wait (%p2297_p5), [#allocation8], 16  }
  0x54   : > { %1709 = vsyncadd (%p2297_p5), [#allocation8], 4294967280 }
  0x55   : > { %1711 = dma.done.wait (%p2297_p5), [#allocation10], 272  }
  0x56   : > { %1713 = vsyncadd (%p2297_p5), [#allocation10], 4294967024 }
  0x57   : > { %240 = sfence }
  0x58   : > { %s2273_s17 = sand.u32 1, %s1724_s19   ;;  %s1262_s11 = sshll.u32 %s1732_s21, 4  ;;  %v259_v0 = vlaneseq  ;;  %vm284_vm0 = vcmask 523264   ;;  %v1759_v2 = vmov 25.0   ;;  %v1760_v3 = vmov 0.0  }
  0x59   : > { %s1924_s6 = sshll.u32 %s2273_s17, 3  ;;  %v264_v1 = vstv %s1262_s11  ;;  %285 = vst.msk [vmem:[#allocation2] sm:$0xff] %vm284_vm0, %v1759_v2  ;;  %286 = vst.msk [vmem:[#allocation2 + $0x8] sm:$0xff] %vm284_vm0, %v1759_v2  ;;  %s1266_s12 = sshll.u32 %s1736_s22, 2 }
  0x5a   : > { %287 = vst.msk [vmem:[#allocation3] sm:$0xff] %vm284_vm0, %v1760_v3  ;;  %288 = vst.msk [vmem:[#allocation3 + $0x8] sm:$0xff] %vm284_vm0, %v1760_v3  ;;  %v260_v4 = vshrl.u32 %v259_v0, 7  ;;  %v263_v5 = vand.u32 127, %v259_v0  ;;  %s1942_s9 = sadd.s32 %s1732_s21, %s1266_s12  ;;  %s1954_s21 = scalar_lea.vmem [#allocation12], %s1924_s6 }
  0x5b   : > { %289 = vst.msk [vmem:[#allocation4] sm:$0xff] %vm284_vm0, %v1760_v3  ;;  %290 = vst.msk [vmem:[#allocation4 + $0x8] sm:$0xff] %vm284_vm0, %v1760_v3  ;;  %s1945_s10 = sld [smem:[#allocation6 + %s1942_s9]] }
  0x5c   : > { %291 = vst.msk [vmem:[#allocation5] sm:$0xff] %vm284_vm0, %v1760_v3  ;;  %292 = vst.msk [vmem:[#allocation5 + $0x8] sm:$0xff] %vm284_vm0, %v1760_v3  ;;  %v261_v6 = vadd.s32 8, %v260_v4  ;;  %v265_v7 = vadd.s32 %v264_v1, %v260_v4  ;;  %v269_v8 = vcvt.s32.f32 %v263_v5 }
  0x5e   : > { %v266_v9 = vadd.s32 %v264_v1, %v261_v6  ;;  %v267_v10 = vcvt.s32.f32 %v265_v7  ;;  %v280_v11 = vmul.f32 2.0, %v269_v8 }
  0x60   : > { %v268_v12 = vcvt.s32.f32 %v266_v9  ;;  %v270_v13 = vsub.f32 63.0, %v267_v10  ;;  %v281_v14 = vadd.f32 1.0, %v280_v11 }
  0x61   : > { %p1267_p3 = scmp.le.s32.totalorder %s1945_s10, 0 }
  0x62   : > { %v271_v15 = vsub.f32 63.0, %v268_v12  ;;  %v272_v16 = vmul.f32 2.0, %v270_v13  ;;  %v1265_v17 = vadd.f32 -64.0, %v281_v14  ;;  %s1957_s13 = smov (!%p1267_p3), 0  }
  0x64   : > { %v273_v18 = vmul.f32 2.0, %v271_v15  ;;  %v274_v19 = vadd.f32 1.0, %v272_v16  ;;  %v1947_v20 = vmul.f32 0.015625, %v1265_v17 }
  0x66   : > { %v275_v21 = vadd.f32 1.0, %v273_v18  ;;  %v1263_v22 = vadd.f32 -64.0, %v274_v19  ;;  %1195 = sbr.rel (%p1267_p3) target bundleno = 208 (0xd0), region = 86 }
  0x68   : > { %v1264_v23 = vadd.f32 -64.0, %v275_v21  ;;  %v1949_v24 = vmul.f32 0.015625, %v1263_v22 }
  0x6a   : > { %v1951_v25 = vmul.f32 0.015625, %v1264_v23 }
  0x6b LB: >> { %s2298_s22 = sld [smem:[#allocation16_spill]]  ;;  %s1268_s14 = sshll.u32 %s1942_s9, 3  ;;  %s1752_s13 = sphi %s1957_s13, %s299_s13  }
  0x6c   : >> { %s303_s15 = sadd.s32 %s1752_s13, %s1268_s14  ;;  %s299_s13 = sadd.s32 1, %s1752_s13  }
  0x6d   : >> { %s304_s26 = sld [smem:[#allocation9 + %s303_s15]]  ;;  %p298_p8 = scmp.ge.s32.totalorder %s299_s13, %s1945_s10 }
  0x71   : >> { %s1269_s1 = sshll.u32 %s2298_s22, 3 }
  0x73   : >> { %s306_s27 = sadd.s32 %s1269_s1, %s304_s26 }
  0x74   : >> { %s307_s30 = sld [smem:[#allocation11 + %s306_s27]]  ;;  %s308_s11 = sshra.s32 %s306_s27, 7 }
  0x75   : >> { %s1965_s6 = sshll.u32 %s308_s11, 7  ;;  %s1967_s12 = sand.u32 127, %s306_s27 }
  0x76   : >> { %s1299_s14 = sadd.s32 128, %s1965_s6  ;;  %s1301_s15 = sadd.s32 256, %s1965_s6 }
  0x77   : >> { %s314_s17 = sadd.s32 %s1299_s14, %s1967_s12  ;;  %s318_s26 = sadd.s32 %s1301_s15, %s1967_s12 }
  0x78   : >> { %s315_s1 = sld [smem:[#allocation11 + %s314_s17]]  ;;  %s1303_s0 = sadd.s32 384, %s1965_s6 }
  0x79   : >> { %s319_s11 = sld [smem:[#allocation11 + %s318_s26]]  ;;  %s322_s2 = sadd.s32 %s1303_s0, %s1967_s12 }
  0x7a   : >> { %s323_s22 = sld [smem:[#allocation11 + %s322_s2]]  ;;  %s1305_s29 = sadd.s32 512, %s1965_s6  ;;  %v344_v26 = vstv %s307_s30 }
  0x7b   : >> { %s326_s28 = sadd.s32 %s1305_s29, %s1967_s12  ;;  %s1307_s27 = sadd.s32 640, %s1965_s6  ;;  %v345_v27 = vmul.f32 %v344_v26, %v1947_v20 }
  0x7c   : >> { %s327_s24 = sld [smem:[#allocation11 + %s326_s28]]  ;;  %s330_s23 = sadd.s32 %s1307_s27, %s1967_s12 }
  0x7d   : >> { %s331_s16 = sld [smem:[#allocation11 + %s330_s23]]  ;;  %s1315_s0 = sadd.s32 1152, %s1965_s6 }
  0x7e   : >> { %v346_v28 = vstv %s315_s1  ;;  %s1985_s2 = sadd.s32 %s1315_s0, %s1967_s12  ;;  %s1317_s23 = sadd.s32 1280, %s1965_s6 }
  0x7f   : >> { %v347_v29 = vmul.f32 %v346_v28, %v1949_v24  ;;  %v348_v30 = vmul.f32 %v346_v28, %v1951_v25  ;;  %v351_v31 = vstv %s319_s11  ;;  %s1319_s28 = sadd.s32 1408, %s1965_s6  ;;  %s1309_s29 = sadd.s32 768, %s1965_s6 }
  0x80   : >> { %v354_v32 = vstv %s323_s22  ;;  %s1995_s22 = sadd.s32 %s1317_s23, %s1967_s12  ;;  %s1313_s17 = sadd.s32 1024, %s1965_s6 }
  0x81   : >> { %v349_v33 = vadd.f32 %v347_v29, %v345_v27  ;;  %v355_v34 = vmul.f32 %v354_v32, %v1947_v20  ;;  %v350_v35 = vadd.f32 %v348_v30, %v345_v27  ;;  %s334_s30 = sadd.s32 %s1309_s29, %s1967_s12  ;;  %s342_s15 = sadd.s32 %s1313_s17, %s1967_s12 }
  0x82   : >> { %v356_v36 = vstv %s327_s24  ;;  %s2001_s24 = sadd.s32 %s1319_s28, %s1967_s12  ;;  %s335_s26 = sld [smem:[#allocation11 + %s334_s30]] }
  0x83   : >> { %v1987_v37 = vadd.f32 %v351_v31, %v349_v33  ;;  %v357_v38 = vmul.f32 %v356_v36, %v1949_v24  ;;  %v1990_v39 = vadd.f32 %v351_v31, %v350_v35  ;;  %v361_v40 = vstv %s331_s16  ;;  %s1311_s16 = sadd.s32 896, %s1965_s6  ;;  %s343_s11 = sld [smem:[#allocation11 + %s342_s15]] }
  0x84   : >> { %v358_v41 = vmul.f32 %v356_v36, %v1951_v25  ;;  %s338_s14 = sadd.s32 %s1311_s16, %s1967_s12  ;;  %s2026_s6 = sld [smem:[#allocation11 + %s1985_s2]] }
  0x85   : >> { %v359_v42 = vadd.f32 %v357_v38, %v355_v34  ;;  %v364_v43 = vsub.f32 1.0, %v1987_v37  ;;  %v378_v44 = vmax.f32 %v1987_v37, 0.0  ;;  %v365_v46 = vsub.f32 1.0, %v1990_v39  ;;  %s339_s1 = sld [smem:[#allocation11 + %s338_s14]] }
  0x86   : >> { %v360_v45 = vadd.f32 %v358_v41, %v355_v34  ;;  %v379_v48 = vmax.f32 %v1990_v39, 0.0  ;;  %vm368_vm1 = vcmp.ge.f32.partialorder %v1987_v37, 0.0  ;;  %s2031_s12 = sld [smem:[#allocation11 + %s1995_s22]]  ;;  %vm369_vm3 = vcmp.ge.f32.partialorder %v1990_v39, 0.0  ;;  %v433_v37 = vld [vmem:[#allocation2] sm:$0xff] }
  0x87   : >> { %v2004_v47 = vadd.f32 %v361_v40, %v359_v42  ;;  %v380_v51 = vmin.f32 %v378_v44, 1.0  ;;  %s2034_s27 = sld [smem:[#allocation11 + %s2001_s24]] }
  0x88   : >> { %v2007_v49 = vadd.f32 %v361_v40, %v360_v45  ;;  %v381_v54 = vmin.f32 %v379_v48, 1.0  ;;  %v410_v12 = vstv %s335_s26  ;;  %v463_v48 = vld [vmem:[#allocation3] sm:$0xff] }
  0x89   : >> { %v2010_v50 = vsub.f32 %v364_v43, %v2004_v47  ;;  %v382_v52 = vmax.f32 %v2004_v47, 0.0  ;;  %v418_v14 = vstv %s343_s11  ;;  %vm370_vm2 = vcmp.ge.f32.partialorder %v2004_v47, 0.0  ;;  %v434_v47 = vld [vmem:[#allocation2 + $0x8] sm:$0xff] }
  0x8a   : >> { %v2014_v53 = vsub.f32 %v365_v46, %v2007_v49  ;;  %v383_v55 = vmax.f32 %v2007_v49, 0.0  ;;  %vm371_vm4 = vcmp.ge.f32.partialorder %v2007_v49, 0.0  ;;  %vm372_vm5 = vmand %vm368_vm1, %vm370_vm2  ;;  %v465_v49 = vstv %s2026_s6 }
  0x8b   : >> { %v384_v56 = vmin.f32 %v382_v52, 1.0  ;;  %v386_v57 = vmax.f32 %v2010_v50, 0.0  ;;  %v413_v13 = vstv %s339_s1  ;;  %vm374_vm6 = vcmp.ge.f32.partialorder %v2010_v50, 0.0  ;;  %vm373_vm7 = vmand %vm369_vm3, %vm371_vm4  ;;  %v470_v50 = vld [vmem:[#allocation4] sm:$0xff]  ;;  %v477_v52 = vld [vmem:[#allocation5] sm:$0xff] }
  0x8c   : >> { %v385_v58 = vmin.f32 %v383_v55, 1.0  ;;  %v387_v59 = vmax.f32 %v2014_v53, 0.0  ;;  %vm375_vm8 = vcmp.ge.f32.partialorder %v2014_v53, 0.0  ;;  %vm376_vm9 = vmand %vm372_vm5, %vm374_vm6 }
  0x8d   : >> { %v388_v60 = vmin.f32 %v386_v57, 1.0  ;;  %v390_v61 = vadd.f32 %v384_v56, %v380_v51  ;;  %vm2040_vm13 = vmand %vm373_vm7, %vm375_vm8  ;;  %v479_v53 = vstv %s2034_s27 }
  0x8e   : >> { %v389_v62 = vmin.f32 %v387_v59, 1.0  ;;  %v391_v63 = vadd.f32 %v385_v58, %v381_v54 }
  0x8f   : >> { %v392_v0 = vadd.f32 %v390_v61, %v388_v60 }
  0x90   : >> { %v393_v1 = vadd.f32 %v391_v63, %v389_v62 }
  0x91   : >> { %v394_v2 = vmax.f32 %v392_v0, 0.001 }
  0x92   : >> { %v395_v4 = vmax.f32 %v393_v1, 0.001 }
  0x93   : >> { %1591 = vrcp.f32 %v394_v2 }
  0x94   : >> { %1593 = vrcp.f32 %v395_v4 }
  0xa0   : >> { %v1592_v5 = vpop.eup %1591 }
  0xa1   : >> { %v1594_v6 = vpop.eup %1593  ;;  %v398_v7 = vmul.f32 %v1592_v5, %v394_v2 }
  0xa2   : >> { %v399_v8 = vmul.f32 %v1594_v6, %v395_v4 }
  0xa3   : >> { %v400_v9 = vsub.f32 2.0, %v398_v7 }
  0xa4   : >> { %v401_v10 = vsub.f32 2.0, %v399_v8 }
  0xa5   : >> { %v402_v11 = vmul.f32 %v1592_v5, %v400_v9 }
  0xa6   : >> { %v403_v15 = vmul.f32 %v1594_v6, %v401_v10 }
  0xa7   : >> { %v404_v16 = vmul.f32 %v402_v11, %v380_v51  ;;  %v406_v17 = vmul.f32 %v402_v11, %v384_v56  ;;  %v408_v18 = vmul.f32 %v402_v11, %v388_v60  ;;  %v472_v51 = vstv %s2031_s12  ;;  %v478_v60 = vld [vmem:[#allocation5 + $0x8] sm:$0xff] }
  0xa8   : >> { %v405_v19 = vmul.f32 %v403_v15, %v381_v54  ;;  %v407_v21 = vmul.f32 %v403_v15, %v385_v58  ;;  %v409_v22 = vmul.f32 %v403_v15, %v389_v62  ;;  %v464_v54 = vld [vmem:[#allocation3 + $0x8] sm:$0xff]  ;;  %v471_v58 = vld [vmem:[#allocation4 + $0x8] sm:$0xff] }
  0xa9   : >> { %v411_v23 = vmul.f32 %v410_v12, %v404_v16  ;;  %v414_v26 = vmul.f32 %v413_v13, %v406_v17  ;;  %v419_v27 = vmul.f32 %v418_v14, %v408_v18 }
  0xaa   : >> { %v412_v28 = vmul.f32 %v410_v12, %v405_v19  ;;  %v415_v29 = vmul.f32 %v413_v13, %v407_v21  ;;  %v420_v30 = vmul.f32 %v418_v14, %v409_v22 }
  0xab   : >> { %v416_v31 = vadd.f32 %v414_v26, %v411_v23 }
  0xac   : >> { %v417_v32 = vadd.f32 %v415_v29, %v412_v28 }
  0xad   : >> { %v421_v33 = vadd.f32 %v419_v27, %v416_v31 }
  0xae   : >> { %v422_v34 = vadd.f32 %v420_v30, %v417_v32 }
  0xaf   : >> { %v423_v35 = vmax.f32 %v421_v33, 1e-08 }
  0xb0   : >> { %v424_v36 = vmax.f32 %v422_v34, 1e-08 }
  0xb1   : >> { %1595 = vrcp.f32 %v423_v35 }
  0xb2   : >> { %1597 = vrcp.f32 %v424_v36 }
  0xbe   : >> { %v1596_v38 = vpop.eup %1595 }
  0xbf   : >> { %v1598_v40 = vpop.eup %1597  ;;  %v427_v41 = vmul.f32 %v1596_v38, %v423_v35 }
  0xc0   : >> { %v428_v42 = vmul.f32 %v1598_v40, %v424_v36 }
  0xc1   : >> { %v429_v43 = vsub.f32 2.0, %v427_v41 }
  0xc2   : >> { %v430_v44 = vsub.f32 2.0, %v428_v42 }
  0xc3   : >> { %v431_v45 = vmul.f32 %v1596_v38, %v429_v43 }
  0xc4   : >> { %v432_v46 = vmul.f32 %v1598_v40, %v430_v44 }
  0xc5   : >> { %vm435_vm10 = vcmp.gt.f32.partialorder %v431_v45, 0.1  ;;  %vm439_vm11 = vcmp.lt.f32.partialorder %v431_v45, 25.0  ;;  %vm443_vm12 = vcmp.lt.f32.partialorder %v431_v45, %v433_v37 }
  0xc6   : >> { %vm437_vm14 = vmand %vm376_vm9, %vm435_vm10  ;;  %vm436_vm15 = vcmp.gt.f32.partialorder %v432_v46, 0.1  ;;  %vm440_vm2 = vcmp.lt.f32.partialorder %v432_v46, 25.0  ;;  %vm444_vm4 = vcmp.lt.f32.partialorder %v432_v46, %v434_v47 }
  0xc7   : >> { %vm441_vm1 = vmand %vm437_vm14, %vm439_vm11 }
  0xc8   : >> { %vm445_vm3 = vmand %vm441_vm1, %vm443_vm12 }
  0xc9   : >> { %v447_v55 = vsel %vm445_vm3, %v431_v45, %v433_v37  ;;  %vm438_vm5 = vmand %vm2040_vm13, %vm436_vm15  ;;  %v466_v56 = vsel %vm445_vm3, %v465_v49, %v463_v48  ;;  %v473_v57 = vsel %vm445_vm3, %v472_v51, %v470_v50  ;;  %v480_v59 = vsel %vm445_vm3, %v479_v53, %v477_v52 }
  0xca   : >> { %449 = vst.msk [vmem:[#allocation2] sm:$0xff] %vm284_vm0, %v447_v55  ;;  %vm442_vm6 = vmand %vm438_vm5, %vm440_vm2 }
  0xcb   : >> { %468 = vst.msk [vmem:[#allocation3] sm:$0xff] %vm284_vm0, %v466_v56  ;;  %475 = vst.msk [vmem:[#allocation4] sm:$0xff] %vm284_vm0, %v473_v57  ;;  %301 = sbr.rel (!%p298_p8) target bundleno = 107 (0x6b), region = 92 }
  0xcc   : >> { %482 = vst.msk [vmem:[#allocation5] sm:$0xff] %vm284_vm0, %v480_v59  ;;  %vm446_vm7 = vmand %vm442_vm6, %vm444_vm4 }
  0xcd   : >> { %v448_v61 = vsel %vm446_vm7, %v432_v46, %v434_v47  ;;  %v467_v62 = vsel %vm446_vm7, %v465_v49, %v464_v54  ;;  %v474_v63 = vsel %vm446_vm7, %v472_v51, %v471_v58  ;;  %v481_v0 = vsel %vm446_vm7, %v479_v53, %v478_v60 }
  0xce   : >> { %450 = vst.msk [vmem:[#allocation2 + $0x8] sm:$0xff] %vm284_vm0, %v448_v61  ;;  %469 = vst.msk [vmem:[#allocation3 + $0x8] sm:$0xff] %vm284_vm0, %v467_v62 }
  0xcf   : >> { %476 = vst.msk [vmem:[#allocation4 + $0x8] sm:$0xff] %vm284_vm0, %v474_v63  ;;  %483 = vst.msk [vmem:[#allocation5 + $0x8] sm:$0xff] %vm284_vm0, %v481_v0 }
  0xd0 PF: > { %1368 = vmatprep.subr.mxu1 %v1760_v3  ;;  %1394 = vmatprep.subr.mxu0 %v1760_v3  ;;  %v2068_v6 = vld [vmem:[%s2266_s3] sm:$0xff]  ;;  %vm495_vm8 = vcmask 130048   ;;  %vm1761_vm9 = vmmov 0   ;;  %v2077_v20 = vld [vmem:[%s2267_s4 + $0x38] sm:$0xff]  ;;  %v2088_v24 = vld [vmem:[%s2267_s4 + $0x30] sm:$0xff]  ;;  %v1762_v21 = vmov 1.0  }
  0xd1   : > { %1372 = vmatprep.mubr.msk.f32.mxu1 %vm1761_vm9, %v1760_v3  ;;  %1398 = vmatprep.mubr.msk.f32.mxu0 %vm1761_vm9, %v1760_v3  ;;  %v2097_v25 = vld [vmem:[%s2267_s4 + $0x28] sm:$0xff]  ;;  %v2106_v7 = vld [vmem:[%s2267_s4 + $0x20] sm:$0xff]  ;;  %v2115_v8 = vld [vmem:[%s2267_s4 + $0x18] sm:$0xff]  ;;  %vm650_vm12 = vcmask 261120   ;;  %s1763_s12 = smov 32   ;;  %vm813_vm13 = vcmask 523520  }
  0xd2   : > { %v492_v4 = vld [vmem:[#allocation3] sm:$0xff]  ;;  %v652_v5 = vld [vmem:[#allocation4] sm:$0xff]  ;;  %v2133_v10 = vld [vmem:[%s2267_s4 + $0x8] sm:$0xff]  ;;  %s1764_s27 = smov 64   ;;  %s1765_s0 = smov 96   ;;  %vm1137_vm14 = vcmask 1048320  }
  0xd3   : > { %v2124_v9 = vld [vmem:[%s2267_s4 + $0x10] sm:$0xff]  ;;  %v2142_v11 = vld [vmem:[%s2267_s4] sm:$0xff]  ;;  %s1295_s2 = sshll.u32 %s1942_s9, 7  ;;  %s1155_s10 = sshll.u32 %s1954_s21, 4  ;;  %s1156_s10 = int_to_ptr.vmem [resolvable:$true] %s1155_s10 }
  0xd4   : > { %v484_v14 = vld [vmem:[#allocation2] sm:$0xff]  ;;  %v815_v17 = vld [vmem:[#allocation5] sm:$0xff]  ;;  %s2213_s22 = scalar_lea.hbm %s2268_s5, %s1295_s2  ;;  %s2301_s28 = sand.u32 1, %s1724_s19  }
  0xd5   : > { %v493_v1 = vld [vmem:[#allocation3 + $0x8] sm:$0xff]  ;;  %v485_v12 = vld [vmem:[#allocation2 + $0x8] sm:$0xff]  ;;  %vm486_vm11 = vcmp.lt.f32.partialorder %v484_v14, 25.0  ;;  %s1140_s24 = scalar_lea.sflag [#allocation7], %s2301_s28  ;;  %s1644_s29 = scalar_lea.vmem %s1156_s10, 128 }
  0xd6   : > { %v653_v2 = vld [vmem:[#allocation4 + $0x8] sm:$0xff]  ;;  %1369 = vmatpush3.msra.mxu1 %v493_v1  ;;  %v816_v13 = vld [vmem:[#allocation5 + $0x8] sm:$0xff]  ;;  %vm487_vm10 = vcmp.lt.f32.partialorder %v485_v12, 25.0  ;;  %p1645_p10 = scmp.ne.s32.totalorder %s1156_s10, %s1644_s29  ;;  %p2302_p12 = scmp.ne.s32.totalorder %s2286_s7, 0 }
  0xd7   : > { %1395 = vmatpush3.msra.mxu0 %v653_v2  ;;  %1370 = vmatprep.subr.mxu1 %v1760_v3  ;;  %s1766_s9 = smov [#allocation12]  }
  0xd8   : > { %1396 = vmatprep.subr.mxu0 %v1760_v3  ;;  %1371 = vmatpush3.msra.mxu1 %v492_v4  ;;  %p1646_p0 = pnand %p1645_p10, %p2302_p12  ;;  %s1648_s16 = sshll.u32 %s1766_s9, 4  ;;  %s1649_s16 = int_to_ptr.vmem [resolvable:$false] %s1648_s16 }
  0xd9   : > { %1397 = vmatpush3.msra.mxu0 %v652_v5  ;;  %1373 = vmatmul.mubr.msk.f32.vlgmr.msra.gmra.mxu1 %vm495_vm8, %v2068_v6  ;;  %s1650_s17 = scalar_lea.vmem %s1649_s16, 256  ;;  %p1651_p6 = scmp.lt.s32.totalorder %s1156_s10, %s1649_s16 }
  0xda   : > { %1399 = vmatmul.mubr.msk.f32.vlgmr.msra.gmra.mxu0 %vm495_vm8, %v2068_v6  ;;  %1375 = vmatprep.subr.mxu1 %v1760_v3  ;;  %p1647_p2 = pneg %p1646_p0  ;;  %p1652_p7 = scmp.lt.s32.totalorder %s1650_s17, %s1644_s29 }
  0xdb   : > { %1401 = vmatprep.subr.mxu0 %v1760_v3  ;;  %1376 = vmatpush3.msra.mxu1 %v2077_v20 }
  0xdc   : > { %1402 = vmatpush3.msra.mxu0 %v2077_v20  ;;  %1377 = vmatprep.subr.mxu1 %v1760_v3  ;;  %p1653_p9 = por %p1652_p7, %p1651_p6 }
  0xdd   : > { %1403 = vmatprep.subr.mxu0 %v1760_v3  ;;  %1378 = vmatpush3.msra.mxu1 %v2088_v24 }
  0xde   : > { %1404 = vmatpush3.msra.mxu0 %v2088_v24  ;;  %1379 = vmatprep.subr.mxu1 %v1760_v3  ;;  %p1654_p11 = pnand %p1653_p9, %p1647_p2 }
  0xdf   : > { %1405 = vmatprep.subr.mxu0 %v1760_v3  ;;  %1380 = vmatpush3.msra.mxu1 %v2097_v25 }
  0xe0   : > { %1406 = vmatpush3.msra.mxu0 %v2097_v25  ;;  %1381 = vmatprep.subr.mxu1 %v1760_v3 }
  0xe1   : > { %1407 = vmatprep.subr.mxu0 %v1760_v3  ;;  %1382 = vmatpush3.msra.mxu1 %v2106_v7 }
  0xe2   : > { %1408 = vmatpush3.msra.mxu0 %v2106_v7  ;;  %1383 = vmatprep.subr.mxu1 %v1760_v3 }
  0xe3   : > { %1409 = vmatprep.subr.mxu0 %v1760_v3  ;;  %1384 = vmatpush3.msra.mxu1 %v2115_v8 }
  0xe4   : > { %1410 = vmatpush3.msra.mxu0 %v2115_v8  ;;  %1385 = vmatprep.subr.mxu1 %v1760_v3 }
  0xe5   : > { %1411 = vmatprep.subr.mxu0 %v1760_v3  ;;  %1386 = vmatpush3.msra.mxu1 %v2124_v9 }
  0xe6   : > { %1412 = vmatpush3.msra.mxu0 %v2124_v9  ;;  %1387 = vmatprep.subr.mxu1 %v1760_v3 }
  0xe7   : > { %1413 = vmatprep.subr.mxu0 %v1760_v3  ;;  %1388 = vmatpush3.msra.mxu1 %v2133_v10 }
  0xe8   : > { %1414 = vmatpush3.msra.mxu0 %v2133_v10  ;;  %1389 = vmatprep.subr.mxu1 %v1760_v3 }
  0xe9   : > { %1415 = vmatprep.subr.mxu0 %v1760_v3  ;;  %1390 = vmatpush3.msra.mxu1 %v2142_v11 }
  0xea   : > { %1391 = vmatprep.mubr.msk.f32.mxu1 %vm1761_vm9, %v1760_v3  ;;  %1416 = vmatpush3.msra.mxu0 %v2142_v11 }
  0xeb   : > { %1417 = vmatprep.mubr.msk.f32.mxu0 %vm1761_vm9, %v1760_v3  ;;  %1420 = vmatprep.subr.mxu1 %v1760_v3 }
  0xec   : > { %1446 = vmatprep.subr.mxu0 %v1760_v3 }
 0x199   : > { %v565_v15 = vpop.f32.mrf.mxu1 }
 0x19a   : > { %v724_v16 = vpop.f32.mrf.mxu0  ;;  %1392 = vmatmul.mubr.msk.f32.vlgmr.msra.gmra.mxu1 %vm284_vm0, %v565_v15 }
 0x19b   : > { %1418 = vmatmul.mubr.msk.f32.vlgmr.msra.gmra.mxu0 %vm284_vm0, %v724_v16  ;;  %1421 = vmatpush3.msra.mxu1 %v816_v13  ;;  %v1374_v18 = vpop.f32.mrf.mxu1 }
 0x19c   : > { %v1400_v19 = vpop.f32.mrf.mxu0  ;;  %1447 = vmatpush3.msk.msra.mxu0 %vm487_vm10, %v1762_v21  ;;  %1422 = vmatprep.subr.mxu1 %v1760_v3 }
 0x19d   : > { %1448 = vmatprep.subr.mxu0 %v1760_v3  ;;  %1423 = vmatpush3.msra.mxu1 %v815_v17 }
 0x19e   : > { %1424 = vmatprep.mubr.msk.f32.mxu1 %vm1761_vm9, %v1760_v3  ;;  %1449 = vmatpush3.msk.msra.mxu0 %vm486_vm11, %v1762_v21 }
 0x19f   : > { %1450 = vmatprep.mubr.msk.f32.mxu0 %vm1761_vm9, %v1760_v3  ;;  %1425 = vmatmul.mubr.msk.f32.vlgmr.msra.gmra.mxu1 %vm495_vm8, %v2068_v6 }
 0x1a0   : > { %1451 = vmatmul.mubr.msk.f32.vlgmr.msra.gmra.mxu0 %vm495_vm8, %v2068_v6  ;;  %1427 = vmatprep.subr.mxu1 %v1760_v3 }
 0x1a1   : > { %1453 = vmatprep.subr.mxu0 %v1760_v3  ;;  %1428 = vmatpush3.msra.mxu1 %v2077_v20 }
 0x1a2   : > { %1454 = vmatpush3.msra.mxu0 %v2077_v20  ;;  %1429 = vmatprep.subr.mxu1 %v1760_v3 }
 0x1a3   : > { %1455 = vmatprep.subr.mxu0 %v1760_v3  ;;  %1430 = vmatpush3.msra.mxu1 %v2088_v24 }
 0x1a4   : > { %1456 = vmatpush3.msra.mxu0 %v2088_v24  ;;  %1431 = vmatprep.subr.mxu1 %v1760_v3 }
 0x1a5   : > { %1457 = vmatprep.subr.mxu0 %v1760_v3  ;;  %1432 = vmatpush3.msra.mxu1 %v2097_v25 }
 0x1a6   : > { %1458 = vmatpush3.msra.mxu0 %v2097_v25  ;;  %1433 = vmatprep.subr.mxu1 %v1760_v3 }
 0x1a7   : > { %1459 = vmatprep.subr.mxu0 %v1760_v3  ;;  %1434 = vmatpush3.msra.mxu1 %v2106_v7 }
 0x1a8   : > { %1460 = vmatpush3.msra.mxu0 %v2106_v7  ;;  %1435 = vmatprep.subr.mxu1 %v1760_v3 }
 0x1a9   : > { %1461 = vmatprep.subr.mxu0 %v1760_v3  ;;  %1436 = vmatpush3.msra.mxu1 %v2115_v8 }
 0x1aa   : > { %1462 = vmatpush3.msra.mxu0 %v2115_v8  ;;  %1437 = vmatprep.subr.mxu1 %v1760_v3 }
 0x1ab   : > { %1463 = vmatprep.subr.mxu0 %v1760_v3  ;;  %1438 = vmatpush3.msra.mxu1 %v2124_v9 }
 0x1ac   : > { %1464 = vmatpush3.msra.mxu0 %v2124_v9  ;;  %1439 = vmatprep.subr.mxu1 %v1760_v3 }
 0x1ad   : > { %1465 = vmatprep.subr.mxu0 %v1760_v3  ;;  %1440 = vmatpush3.msra.mxu1 %v2133_v10 }
 0x1ae   : > { %1466 = vmatpush3.msra.mxu0 %v2133_v10  ;;  %1441 = vmatprep.subr.mxu1 %v1760_v3 }
 0x1af   : > { %1467 = vmatprep.subr.mxu0 %v1760_v3  ;;  %1442 = vmatpush3.msra.mxu1 %v2142_v11 }
 0x1b0   : > { %1443 = vmatprep.mubr.msk.f32.mxu1 %vm1761_vm9, %v1760_v3  ;;  %1468 = vmatpush3.msra.mxu0 %v2142_v11 }
 0x1b1   : > { %1469 = vmatprep.mubr.msk.f32.mxu0 %vm1761_vm9, %v1760_v3 }
 0x25a   : > { %v646_v22 = vpop.f32.mrf.mxu1 }
 0x25b   : > { %v805_v23 = vpop.f32.mrf.mxu0  ;;  %651 = vst.msk [vmem:[%s1954_s21] sm:$0xff] %vm650_vm12, %v646_v22 }
 0x25c   : > { %810 = vrot.lane.b32.xlu0 %v805_v23, %s1763_s12  ;;  %v1393_v26 = vpop.f32.mrf.mxu1 }
 0x25d   : > { %v1419_v27 = vpop.f32.mrf.mxu0 }
 0x25f   : > { %v887_v28 = vpop.f32.mrf.mxu1 }
 0x260   : > { %v1048_v29 = vpop.f32.mrf.mxu0  ;;  %1444 = vmatmul.mubr.msk.f32.vlgmr.msra.gmra.mxu1 %vm284_vm0, %v887_v28 }
 0x261   : > { %1470 = vmatmul.mubr.msk.f32.vlgmr.msra.gmra.mxu0 %vm284_vm0, %v1048_v29  ;;  %v1426_v30 = vpop.f32.mrf.mxu1  ;;  %vm976_vm0 = vcmask 785920  }
 0x262   : > { %v1452_v31 = vpop.f32.mrf.mxu0 }
 0x2ce   : > { %v811_v3 = vpop.permute.xlu0 %810 }
 0x2cf   : > { %814 = vst.msk [vmem:[%s1954_s21] sm:$0xff] %vm813_vm13, %v811_v3 }
 0x320   : > { %v968_v32 = vpop.f32.mrf.mxu1 }
 0x321   : > { %v1129_v33 = vpop.f32.mrf.mxu0  ;;  %973 = vrot.lane.b32.xlu0 %v968_v32, %s1764_s27 }
 0x322   : > { %1134 = vrot.lane.b32.xlu1 %v1129_v33, %s1765_s0  ;;  %v1445_v34 = vpop.f32.mrf.mxu1 }
 0x323   : > { %v1471_v35 = vpop.f32.mrf.mxu0 }
 0x393   : > { %v974_v36 = vpop.permute.xlu0 %973 }
 0x394   : > { %v1135_v38 = vpop.permute.xlu1 %1134  ;;  %977 = vst.msk [vmem:[%s1954_s21] sm:$0xff] %vm976_vm0, %v974_v36 }
 0x395   : > { %1138 = vst.msk [vmem:[%s1954_s21] sm:$0xff] %vm1137_vm14, %v1135_v38 }
 0x396   : > { %1657 = shalt.err (!%p1654_p11)
}
 0x397   : > { %s1658_s21 = scalar_lea.hbm %s2213_s22, 128  ;;  %s1662_s15 = scalar_lea.hbm %s2268_s5, 1024 }
 0x398   : > { %p1659_p13 = scmp.ne.s32.totalorder %s2213_s22, %s1658_s21  ;;  %p1663_p5 = scmp.lt.s32.totalorder %s2213_s22, %s2268_s5 }
 0x399   : > { %p1664_p3 = scmp.lt.s32.totalorder %s1662_s15, %s1658_s21 }
 0x39a   : > { %p1660_p1 = pnand %p1659_p13, %p2302_p12 }
 0x39b   : > { %p1665_p8 = por %p1664_p3, %p1663_p5 }
 0x39c   : > { %p1661_p4 = pneg %p1660_p1 }
 0x39e   : > { %p1666_p10 = pnand %p1665_p8, %p1661_p4 }
 0x3a0   : > { %1669 = shalt.err (!%p1666_p10)
}
 0x3a1   : > { %1484 = dma.vmem_to_hbm [thread:$0]  (%p2302_p12), %s1156_s10, 128, %s2213_s22, %s1140_s24  }
 0x3a2 PF: > { %p1506_p0 = scmp.ge.s32.totalorder %s1748_s25, 2  ;;  %s1167_s11 = sand.u32 1, %s1720_s18  }
 0x3a3   : > { %p2303_p2 = scmp.ne.s32.totalorder %s2288_s8, 0  ;;  %s1168_s6 = scalar_lea.sflag [#allocation7], %s1167_s11 }
 0x3a5   : > { %p1497_p6 = pnand %p1506_p0, %p2303_p2 }
 0x3a7   : > { %p1498_p7 = pneg %p1497_p6 }
 0x3a9   : > { %1715 = dma.done.wait (%p1498_p7), %s1168_s6, 128  }
 0x3aa   : > { %1717 = vsyncadd (%p1498_p7), %s1168_s6, 4294967168  ;;  %s20_s25 = sadd.s32 1, %s1748_s25   ;;  %s2304_s7 = sld [smem:[#allocation21_spill]] }
 0x3ab   : > { %p17_p9 = scmp.ge.s32.totalorder %s20_s25, 10   ;;  %s2305_s21 = sld [smem:[#allocation17_spill]] }
 0x3ac   : > { %s2306_s22 = sld [smem:[#allocation18_spill]]  ;;  %s2309_s18 = smov %s1724_s19 }
 0x3ad   : > { %s2307_s23 = sld [smem:[#allocation19_spill]]  ;;  %s2310_s19 = smov %s1728_s20 }
 0x3ae   : > { %s2308_s24 = sld [smem:[#allocation20_spill]]  ;;  %19 = sbr.rel (!%p17_p9) target bundleno = 11 (0xb), region = 103 }
 0x3b0   : > { %s2311_s20 = smov %s2304_s7 }
 0x3b3   :  { %1173 = vsyncpa [#allocation7], 1 }
 0x3b4   :  { %1175 = vsyncpa [#allocation7 + $0x1], 1 }
 0x3b5   :  { %1176 = vsyncpa [#allocation8], 1 }
 0x3b6   :  { %1178 = vsyncpa [#allocation8 + $0x1], 1 }
 0x3b7   :  { %1179 = vsyncpa [#allocation10], 1 }

</bundles_post_ra>
